<compile_context>
chip_gen: v6e
topology: v6e:2x2x1
jax: 0.10.0
libtpu: 0.0.40
codegen_flags: <defaults>
</compile_context>

<pallas_src>
import functools

import jax
import jax.numpy as jnp
from jax.experimental import pallas as pl
from jax.experimental.pallas import tpu as pltpu


def _skipgram_ns_kernel(v_ref, u_ref, pos_ref, neg_ref, *, n_pos, n_valid,
                        tile_rows, inv_bs, needs_mask):
    """One batch tile of the fused positive/negative NS loss.

    v_ref:   (TB, d)      center-word embeddings V[x]   (L squeezed)
    u_ref:   (TB, C, d)   fused context rows U[[target | neg_samples]], C=W+K
    pos_ref, neg_ref: (1, 1) f32 resident loss accumulators.
    """
    step = pl.program_id(0)

    @pl.when(step == 0)
    def _init():
        pos_ref[...] = jnp.zeros_like(pos_ref)
        neg_ref[...] = jnp.zeros_like(neg_ref)

    v = v_ref[...].astype(jnp.float32)            # (TB, d)
    u = u_ref[...].astype(jnp.float32)            # (TB, C, d)

    # scores[b, c] = <v[b], u[b, c]> -- VPU multiply + lane (XLU) reduction
    # instead of TB tiny MXU matmuls; f32 accumulation.
    scores = jnp.sum(v[:, None, :] * u, axis=-1)  # (TB, C) f32

    # Context column c < n_pos is a positive (target) row, else a negative one.
    ctx = jax.lax.broadcasted_iota(jnp.int32, scores.shape, 1)
    is_pos = ctx < n_pos
    signed = jnp.where(is_pos, scores, -scores)

    # -log(sigmoid(z)) == softplus(-z); stable log1p form (|signed| == |scores|).
    loss = jnp.maximum(-signed, 0.0) + jnp.log1p(jnp.exp(-jnp.abs(scores)))

    if needs_mask:  # static Python bool: only emitted when a padded tail exists
        row = step * tile_rows + jax.lax.broadcasted_iota(
            jnp.int32, scores.shape, 0)
        loss = jnp.where(row < n_valid, loss, 0.0)

    pos_partial = jnp.sum(jnp.where(is_pos, loss, 0.0)) * inv_bs
    neg_partial = jnp.sum(jnp.where(is_pos, 0.0, loss)) * inv_bs

    # Resident (1,1) output blocks accumulate across the "arbitrary" grid axis.
    pos_ref[...] += jnp.reshape(pos_partial, (1, 1))
    neg_ref[...] += jnp.reshape(neg_partial, (1, 1))


def skipgram_ns_forward(x, target, neg_samples, V_weight, U_weight, *,
                        block_rows=512,
                        vmem_limit_bytes=48 * 1024 * 1024):
    """Pallas-backed equivalent of SkipGramNS.forward(x, target, neg_samples)."""
    bs, L = x.shape
    W = target.shape[1]
    K = neg_samples.shape[1]
    d = V_weight.shape[1]
    C = W + K
    n_q = bs * L

    # Fuse positive + negative context indices -> one gather / one operand.
    ctx_idx = jnp.concatenate([target, neg_samples], axis=1)  # (bs, C)
    if L > 1:
        # TODO(synk): for L > 1 avoid materialising the repeat (index_map trick).
        ctx_idx = jnp.repeat(ctx_idx, L, axis=0)               # (n_q, C)
    x_flat = x.reshape(-1)                                     # (n_q,)

    # Batch tile: large, multiple of 8 (v_c sublane dim); cdiv grid with a
    # zero-padded index tail + in-kernel row mask (no divisor-search cliff).
    tb = min(block_rows, ((n_q + 7) // 8) * 8)
    tb = max(8, (tb // 8) * 8)
    grid_n = pl.cdiv(n_q, tb)
    padded_n = grid_n * tb
    pad = padded_n - n_q
    if pad:
        x_flat = jnp.pad(x_flat, (0, pad))                 # index 0 is valid
        ctx_idx = jnp.pad(ctx_idx, ((0, pad), (0, 0)))

    # Embedding row gathers (few rows, data-dependent) stay as plain-JAX glue.
    # TODO(synk): move in-kernel with scalar prefetch + make_async_copy gather.
    v_c = V_weight[x_flat]       # (padded_n, d)
    u_all = U_weight[ctx_idx]    # (padded_n, C, d)

    kernel = functools.partial(
        _skipgram_ns_kernel,
        n_pos=W, n_valid=n_q, tile_rows=tb, inv_bs=1.0 / bs,
        needs_mask=bool(pad))

    pos, neg = pl.pallas_call(
        kernel,
        out_shape=(jax.ShapeDtypeStruct((1, 1), jnp.float32),
                   jax.ShapeDtypeStruct((1, 1), jnp.float32)),
        grid_spec=pltpu.PrefetchScalarGridSpec(
            num_scalar_prefetch=0,
            grid=(grid_n,),
            in_specs=[
                pl.BlockSpec((tb, d), lambda i: (i, 0)),
                pl.BlockSpec((tb, C, d), lambda i: (i, 0, 0)),
            ],
            out_specs=(
                pl.BlockSpec((1, 1), lambda i: (0, 0)),
                pl.BlockSpec((1, 1), lambda i: (0, 0)),
            ),
        ),
        compiler_params=pltpu.CompilerParams(
            dimension_semantics=("arbitrary",),   # reduction into resident outs
            vmem_limit_bytes=vmem_limit_bytes,
        ),
    )(v_c, u_all)
    return pos[0, 0], neg[0, 0]


def skipgram_ns_ref(x, target, neg_samples, V_weight, U_weight):
    """Pure-JAX reference mirroring the PyTorch SkipGramNS.forward."""
    bs = x.shape[0]
    v_c = V_weight[x].astype(jnp.float32)            # (bs, L, d)
    u_j = U_weight[target].astype(jnp.float32)       # (bs, W, d)
    u_k = U_weight[neg_samples].astype(jnp.float32)  # (bs, K, d)
    pos_scores = jnp.einsum("bld,bwd->blw", v_c, u_j)
    neg_scores = jnp.einsum("bld,bkd->blk", v_c, u_k)
    pos_loss = jnp.sum(-jax.nn.log_sigmoid(pos_scores))
    neg_loss = jnp.sum(-jax.nn.log_sigmoid(-neg_scores))
    return pos_loss / bs, neg_loss / bs


if __name__ == "__main__":
    # Small, TPU-friendly shapes consistent with the module.  bs=40 with
    # block_rows=16 exercises a 3-step grid plus the padded-tail row mask.
    input_dim = 256   # vocab size
    w2v_dim = 128     # embedding dim
    bs = 40           # batch size
    L = 1             # one center word per example (x is (bs, L))
    double_ws = 6     # 2 * window size (target is (bs, double_ws))
    n_neg = 10        # number of negative samples per example

    key = jax.random.PRNGKey(0)
    k_v, k_u, k_x, k_t, k_n = jax.random.split(key, 5)

    # Deterministic parameter init.  The module uses xavier_uniform for V and
    # zeros for U; all-zero U would make every score 0 (flat output), so U gets
    # a small deterministic normal init instead to exercise the compute path.
    xavier_bound = (6.0 / (input_dim + w2v_dim)) ** 0.5
    V_weight = jax.random.uniform(k_v, (input_dim, w2v_dim), jnp.float32,
                                  minval=-xavier_bound, maxval=xavier_bound)
    U_weight = 0.05 * jax.random.normal(k_u, (input_dim, w2v_dim), jnp.float32)

    x = jax.random.randint(k_x, (bs, L), 0, input_dim, dtype=jnp.int32)
    target = jax.random.randint(k_t, (bs, double_ws), 0, input_dim,
                                dtype=jnp.int32)
    neg_samples = jax.random.randint(k_n, (bs, n_neg), 0, input_dim,
                                     dtype=jnp.int32)

    pos_loss, neg_loss = skipgram_ns_forward(x, target, neg_samples,
                                             V_weight, U_weight,
                                             block_rows=16)
    jax.block_until_ready((pos_loss, neg_loss))

    pos_ref, neg_ref = skipgram_ns_ref(x, target, neg_samples,
                                       V_weight, U_weight)
    assert jnp.allclose(pos_loss, pos_ref, rtol=1e-4, atol=1e-4), \
        (pos_loss, pos_ref)
    assert jnp.allclose(neg_loss, neg_ref, rtol=1e-4, atol=1e-4), \
        (neg_loss, neg_ref)

    print("KERNEL_OK")
</pallas_src>

<mosaic_0001>
module attributes {stable_mosaic.version = 11 : i64} {
  func.func @_skipgram_ns_kernel(%arg0: i32, %arg1: memref<16x128xf32, #tpu.memory_space<vmem>>, %arg2: memref<16x16x128xf32, #tpu.memory_space<vmem>>, %arg3: memref<1x1xf32, #tpu.memory_space<vmem>>, %arg4: memref<1x1xf32, #tpu.memory_space<vmem>>) attributes {dimension_semantics = [#tpu.dimension_semantics<arbitrary>], iteration_bounds = array<i64: 3>, scalar_prefetch = 0 : i64, scratch_operands = 0 : i64, tpu.core_type = #tpu.core_type<tc>, window_params = [{transform_indices = @transform_0, window_bounds = array<i64: 16, 128>}, {transform_indices = @transform_1, window_bounds = array<i64: 16, 16, 128>}, {pipeline_mode = #tpu.pipeline_mode<synchronous>, transform_indices = @transform_2, window_bounds = array<i64: 1, 1>}, {pipeline_mode = #tpu.pipeline_mode<synchronous>, transform_indices = @transform_3, window_bounds = array<i64: 1, 1>}]} {
    %c0_i32 = arith.constant 0 : i32
    %0 = arith.cmpi eq, %arg0, %c0_i32 : i32
    %1 = arith.extui %0 : i1 to i32
    %c0_i32_0 = arith.constant 0 : i32
    %2 = arith.cmpi ne, %1, %c0_i32_0 : i32
    scf.if %2 {
      %cst_24 = arith.constant 0.000000e+00 : f32
      %55 = vector.broadcast %cst_24 : f32 to vector<1x1xf32>
      %c0_25 = arith.constant 0 : index
      %c0_26 = arith.constant 0 : index
      %56 = vector.load %arg3[%c0_25, %c0_26] : memref<1x1xf32, #tpu.memory_space<vmem>>, vector<1x1xf32>
      tpu.vector_store %arg3[%c0_25, %c0_26], %55 {strides = array<i32>} : memref<1x1xf32, #tpu.memory_space<vmem>>, vector<1x1xf32>,
      %cst_27 = arith.constant 0.000000e+00 : f32
      %57 = vector.broadcast %cst_27 : f32 to vector<1x1xf32>
      %c0_28 = arith.constant 0 : index
      %c0_29 = arith.constant 0 : index
      %58 = vector.load %arg4[%c0_28, %c0_29] : memref<1x1xf32, #tpu.memory_space<vmem>>, vector<1x1xf32>
      tpu.vector_store %arg4[%c0_28, %c0_29], %57 {strides = array<i32>} : memref<1x1xf32, #tpu.memory_space<vmem>>, vector<1x1xf32>,
    } else {
    }
    %c0 = arith.constant 0 : index
    %c0_1 = arith.constant 0 : index
    %3 = vector.load %arg1[%c0, %c0_1] : memref<16x128xf32, #tpu.memory_space<vmem>>, vector<16x128xf32>
    %c0_2 = arith.constant 0 : index
    %c0_3 = arith.constant 0 : index
    %c0_4 = arith.constant 0 : index
    %4 = vector.load %arg2[%c0_2, %c0_3, %c0_4] : memref<16x16x128xf32, #tpu.memory_space<vmem>>, vector<16x16x128xf32>
    %5 = vector.shape_cast %3 : vector<16x128xf32> to vector<16x1x128xf32>
    %6 = vector.broadcast %5 : vector<16x1x128xf32> to vector<16x16x128xf32>
    %7 = arith.mulf %6, %4 : vector<16x16x128xf32>
    %cst = arith.constant dense<0.000000e+00> : vector<16x16xf32>
    %8 = vector.multi_reduction <add>, %7, %cst [2] : vector<16x16x128xf32> to vector<16x16xf32>
    %9 = tpu.iota {dimensions = array<i32: 1>} : vector<16x16xi32>
    %c6_i32 = arith.constant 6 : i32
    %10 = vector.broadcast %c6_i32 : i32 to vector<16x16xi32>
    %11 = arith.cmpi slt, %9, %10 : vector<16x16xi32>
    %cst_5 = arith.constant 0.000000e+00 : f32
    %12 = vector.broadcast %cst_5 : f32 to vector<16x16xf32>
    %13 = arith.subf %12, %8 : vector<16x16xf32>
    %14 = arith.select %11, %8, %13 : vector<16x16xi1>, vector<16x16xf32>
    %cst_6 = arith.constant 0.000000e+00 : f32
    %15 = vector.broadcast %cst_6 : f32 to vector<16x16xf32>
    %16 = arith.subf %15, %14 : vector<16x16xf32>
    %cst_7 = arith.constant 0.000000e+00 : f32
    %17 = vector.broadcast %cst_7 : f32 to vector<16x16xf32>
    %18 = arith.maximumf %16, %17 : vector<16x16xf32>
    %19 = math.absf %8 : vector<16x16xf32>
    %cst_8 = arith.constant 0.000000e+00 : f32
    %20 = vector.broadcast %cst_8 : f32 to vector<16x16xf32>
    %21 = arith.subf %20, %19 : vector<16x16xf32>
    %22 = math.exp %21 : vector<16x16xf32>
    %23 = math.log1p %22 : vector<16x16xf32>
    %24 = arith.addf %18, %23 : vector<16x16xf32>
    %c16_i32 = arith.constant 16 : i32
    %25 = arith.muli %arg0, %c16_i32 : i32
    %26 = tpu.iota {dimensions = array<i32: 0>} : vector<16x16xi32>
    %27 = vector.broadcast %25 : i32 to vector<16x16xi32>
    %28 = arith.addi %27, %26 : vector<16x16xi32>
    %c40_i32 = arith.constant 40 : i32
    %29 = vector.broadcast %c40_i32 : i32 to vector<16x16xi32>
    %30 = arith.cmpi slt, %28, %29 : vector<16x16xi32>
    %cst_9 = arith.constant 0.000000e+00 : f32
    %31 = vector.broadcast %cst_9 : f32 to vector<16x16xf32>
    %32 = arith.select %30, %24, %31 : vector<16x16xi1>, vector<16x16xf32>
    %cst_10 = arith.constant 0.000000e+00 : f32
    %33 = vector.broadcast %cst_10 : f32 to vector<16x16xf32>
    %34 = arith.select %11, %32, %33 : vector<16x16xi1>, vector<16x16xf32>
    %35 = vector.shape_cast %34 : vector<16x16xf32> to vector<1x16x16xf32>
    %cst_11 = arith.constant dense<0.000000e+00> : vector<1xf32>
    %36 = vector.multi_reduction <add>, %35, %cst_11 [1, 2] : vector<1x16x16xf32> to vector<1xf32>
    %37 = vector.shape_cast %36 : vector<1xf32> to vector<1x1x1xf32>
    %38 = vector.extract %37[0, 0, 0] : f32 from vector<1x1x1xf32>
    %cst_12 = arith.constant 2.500000e-02 : f32
    %39 = arith.mulf %38, %cst_12 : f32
    %cst_13 = arith.constant 0.000000e+00 : f32
    %40 = vector.broadcast %cst_13 : f32 to vector<16x16xf32>
    %41 = arith.select %11, %40, %32 : vector<16x16xi1>, vector<16x16xf32>
    %42 = vector.shape_cast %41 : vector<16x16xf32> to vector<1x16x16xf32>
    %cst_14 = arith.constant dense<0.000000e+00> : vector<1xf32>
    %43 = vector.multi_reduction <add>, %42, %cst_14 [1, 2] : vector<1x16x16xf32> to vector<1xf32>
    %44 = vector.shape_cast %43 : vector<1xf32> to vector<1x1x1xf32>
    %45 = vector.extract %44[0, 0, 0] : f32 from vector<1x1x1xf32>
    %cst_15 = arith.constant 2.500000e-02 : f32
    %46 = arith.mulf %45, %cst_15 : f32
    %c0_16 = arith.constant 0 : index
    %c0_17 = arith.constant 0 : index
    %47 = vector.load %arg3[%c0_16, %c0_17] : memref<1x1xf32, #tpu.memory_space<vmem>>, vector<1x1xf32>
    %48 = vector.broadcast %39 : f32 to vector<1x1xf32>
    %49 = arith.addf %47, %48 : vector<1x1xf32>
    %c0_18 = arith.constant 0 : index
    %c0_19 = arith.constant 0 : index
    %50 = vector.load %arg3[%c0_18, %c0_19] : memref<1x1xf32, #tpu.memory_space<vmem>>, vector<1x1xf32>
    tpu.vector_store %arg3[%c0_18, %c0_19], %49 {strides = array<i32>} : memref<1x1xf32, #tpu.memory_space<vmem>>, vector<1x1xf32>,
    %c0_20 = arith.constant 0 : index
    %c0_21 = arith.constant 0 : index
    %51 = vector.load %arg4[%c0_20, %c0_21] : memref<1x1xf32, #tpu.memory_space<vmem>>, vector<1x1xf32>
    %52 = vector.broadcast %46 : f32 to vector<1x1xf32>
    %53 = arith.addf %51, %52 : vector<1x1xf32>
    %c0_22 = arith.constant 0 : index
    %c0_23 = arith.constant 0 : index
    %54 = vector.load %arg4[%c0_22, %c0_23] : memref<1x1xf32, #tpu.memory_space<vmem>>, vector<1x1xf32>
    tpu.vector_store %arg4[%c0_22, %c0_23], %53 {strides = array<i32>} : memref<1x1xf32, #tpu.memory_space<vmem>>, vector<1x1xf32>,
    return
  }
  func.func @transform_0(%arg0: i32) -> (i32, i32) {
    %c0_i32 = arith.constant 0 : i32
    %c0_i32_0 = arith.constant 0 : i32
    return %arg0, %c0_i32 : i32, i32
  }
  func.func @transform_1(%arg0: i32) -> (i32, i32, i32) {
    %c0_i32 = arith.constant 0 : i32
    %c0_i32_0 = arith.constant 0 : i32
    %c0_i32_1 = arith.constant 0 : i32
    return %arg0, %c0_i32, %c0_i32_0 : i32, i32, i32
  }
  func.func @transform_2(%arg0: i32) -> (i32, i32) {
    %c0_i32 = arith.constant 0 : i32
    %c0_i32_0 = arith.constant 0 : i32
    %c0_i32_1 = arith.constant 0 : i32
    return %c0_i32, %c0_i32_0 : i32, i32
  }
  func.func @transform_3(%arg0: i32) -> (i32, i32) {
    %c0_i32 = arith.constant 0 : i32
    %c0_i32_0 = arith.constant 0 : i32
    %c0_i32_1 = arith.constant 0 : i32
    return %c0_i32, %c0_i32_0 : i32, i32
  }
}

</mosaic_0001>

<bundles_post_ra>
// kernel: tpu_custom_call.1
= control target key start
LH: loop header
LB: loop body
LE: loop exit
PB: predicated region body
PF: predicated region fallthrough
CT: control target
= control target key end

     0   :  { %9 = vsyncpa [#allocation3], 0  ;;  %s3342_s0 = inlined_call_operand.hbm [shape: f32[48,128], index: 0, kind: input, shape index: {}]   ;;  %s3343_s1 = inlined_call_operand.hbm [shape: f32[48,16,128], index: 1, kind: input, shape index: {}]   ;;  %s3344_s2 = inlined_call_operand.hbm [shape: f32[1,1], index: 2, kind: output, shape index: {0}]   ;;  %s3345_s3 = inlined_call_operand.hbm [shape: f32[1,1], index: 3, kind: output, shape index: {1}]  }
   0x1   :  { %11 = vsyncpa [#allocation3 + $0x1], 0 }
   0x2   :  { %12 = vsyncpa [#allocation6], 0 }
   0x3   :  { %14 = vsyncpa [#allocation6 + $0x1], 0 }
   0x4   :  { %15 = vsyncpa [#allocation4], 0 }
   0x5   :  { %16 = vsyncpa [#allocation9], 0  ;;  %s2133_s12 = smov 0   ;;  %s2135_s13 = smov 0  }
   0x6   :  { %s2137_s14 = smov 0   ;;  %s2139_s15 = smov 0  }
   0x7 LB: > { %s2152_s16 = sadd.s32 4294967295, %s2103_s15   ;;  %s2155_s17 = sadd.s32 1, %s2103_s15   ;;  %s2103_s15 = sphi %s2139_s15, %s3627_s15   ;;  %s2099_s14 = sphi %s2137_s14, %s3626_s14   ;;  %s2095_s13 = sphi %s2135_s13, %s3625_s13   ;;  %s2091_s12 = sphi %s2133_s12, %s3624_s12  }
   0x8   : > { %s26_s18 = ssub.s32 %s2103_s15, %s2155_s17  ;;  %s29_s19 = sadd.s32 1, %s2099_s14 }
   0x9   : > { %p27_p0 = scmp.eq.s32.totalorder %s26_s18, 0  ;;  %p36_p1 = scmp.ne.s32.totalorder %s2099_s14, %s2095_s13 }
   0xa   : > { %p37_p2 = scmp.eq.s32.totalorder %s2103_s15, 0  ;;  %p42_p3 = scmp.ne.s32.totalorder %s2095_s13, %s2091_s12 }
   0xb   : > { %s2165_s20 = scalar_select %p27_p0, %s2099_s14, %s29_s19  }
   0xc   : > { %p38_p4 = por %p37_p2, %p36_p1  ;;  %p43_p5 = scmp.eq.s32.totalorder %s2152_s16, 0 }
   0xd   : > { %p1780_p6 = scmp.lt.s32.totalorder %s2103_s15, 3  ;;  %s2174_s22 = sand.u32 1, %s2099_s14  }
   0xe   : > { %p2169_p7 = por %p43_p5, %p42_p3  ;;  %s1736_s23 = sshll.u32 %s2174_s22, 4 }
   0xf   : > { %s1754_s24 = sshll.u32 %s2103_s15, 8  ;;  %s138_s28 = scalar_lea.vmem [#allocation2], %s1736_s23 }
  0x10   : > { %s3408_s21 = scalar_select %p2169_p7, 1, 0 }
  0x11   : > { %s2181_s27 = scalar_lea.hbm %s3342_s0, %s1754_s24  ;;  %s145_s29 = sshll.u32 %s138_s28, 4  ;;  %s2183_s29 = int_to_ptr.vmem [resolvable:$true] %s145_s29 }
  0x12   : > { %p2185_p8 = pnand %p1780_p6, %p38_p4  ;;  %s135_s4 = scalar_lea.sflag [#allocation3], %s2174_s22 }
  0x13   : > { %s1953_s5 = scalar_lea.hbm %s2181_s27, 256  ;;  %s1958_s8 = scalar_lea.hbm %s3342_s0, 768 }
  0x14   : > { %p1954_p10 = scmp.ne.s32.totalorder %s2181_s27, %s1953_s5  ;;  %p1955_p11 = pneg %p2185_p8 }
  0x15   : > { %p1959_p0 = scmp.lt.s32.totalorder %s2181_s27, %s3342_s0  ;;  %p1960_p1 = scmp.lt.s32.totalorder %s1958_s8, %s1953_s5 }
  0x16   : > { %p1956_p12 = pnand %p1955_p11, %p1954_p10 }
  0x17   : > { %p1961_p2 = por %p1960_p1, %p1959_p0 }
  0x18   : > { %p1957_p13 = pneg %p1956_p12 }
  0x1a   : > { %p1962_p3 = pnand %p1961_p2, %p1957_p13 }
  0x1c   : > { %1965 = shalt.err (!%p1962_p3)
}
  0x1d   : > { %s1966_s11 = scalar_lea.vmem %s2183_s29, 256  ;;  %s2105_s12 = smov [#allocation2]  }
  0x1e   : > { %p1967_p4 = scmp.ne.s32.totalorder %s2183_s29, %s1966_s11  ;;  %s1971_s18 = sshll.u32 %s2105_s12, 4  ;;  %s1972_s18 = int_to_ptr.vmem [resolvable:$false] %s1971_s18 }
  0x1f   : > { %s1973_s19 = scalar_lea.vmem %s1972_s18, 512  ;;  %p1974_p10 = scmp.lt.s32.totalorder %s2183_s29, %s1972_s18 }
  0x20   : > { %p1969_p5 = pnand %p1967_p4, %p1955_p11  ;;  %p1975_p12 = scmp.lt.s32.totalorder %s1973_s19, %s1966_s11 }
  0x22   : > { %p1970_p6 = pneg %p1969_p5  ;;  %p1976_p9 = por %p1975_p12, %p1974_p10 }
  0x24   : > { %p1977_p0 = pnand %p1976_p9, %p1970_p6 }
  0x26   : > { %1980 = shalt.err (!%p1977_p0)
}
  0x27   : > { %s2106_s23 = smov 128   ;;  %s2107_s24 = smov 8  }
  0x28   : > { %1776 = dma.hbm_to_vmem [thread:$0]  (!%p2185_p8), %s2181_s27, 256, %s2183_s29, %s135_s4, %s2106_s23, %s2106_s23, %s2107_s24  }
  0x29   : > { %p175_p9 = scmp.lt.s32.totalorder %s2103_s15, 4  ;;  %s1739_s25 = sshll.u32 %s2174_s22, 8 }
  0x2a   : > { %s1756_s26 = sshll.u32 %s2103_s15, 12  ;;  %p3410_p13 = scmp.ge.s32.totalorder %s2103_s15, 1 }
  0x2b   : > { %s2232_s7 = scalar_lea.hbm %s3343_s1, %s1756_s26  ;;  %s159_s8 = scalar_lea.vmem [#allocation5], %s1739_s25 }
  0x2c   : > { %p2225_p1 = pnand %p3410_p13, %p175_p9  ;;  %s167_s9 = sshll.u32 %s159_s8, 4  ;;  %s2234_s9 = int_to_ptr.vmem [resolvable:$true] %s167_s9 }
  0x2d   : > { %s156_s27 = scalar_lea.sflag [#allocation6], %s2174_s22  ;;  %s1981_s29 = scalar_lea.hbm %s2232_s7, 4096 }
  0x2e   : > { %p1982_p2 = scmp.ne.s32.totalorder %s2232_s7, %s1981_s29  ;;  %s1986_s10 = scalar_lea.hbm %s3343_s1, 12288 }
  0x2f   : > { %p1987_p5 = scmp.lt.s32.totalorder %s2232_s7, %s3343_s1  ;;  %p1988_p6 = scmp.lt.s32.totalorder %s1986_s10, %s1981_s29 }
  0x30   : > { %p1984_p3 = pnand %p1982_p2, %p1955_p11 }
  0x31   : > { %p1989_p10 = por %p1988_p6, %p1987_p5 }
  0x32   : > { %p1985_p4 = pneg %p1984_p3 }
  0x34   : > { %p1990_p12 = pnand %p1989_p10, %p1985_p4 }
  0x36   : > { %1993 = shalt.err (!%p1990_p12)
}
  0x37   : > { %s1994_s22 = scalar_lea.vmem %s2234_s9, 4096  ;;  %s2108_s18 = smov [#allocation5]  }
  0x38   : > { %p1995_p0 = scmp.ne.s32.totalorder %s2234_s9, %s1994_s22  ;;  %s1999_s19 = sshll.u32 %s2108_s18, 4  ;;  %s2000_s19 = int_to_ptr.vmem [resolvable:$false] %s1999_s19 }
  0x39   : > { %s2001_s25 = scalar_lea.vmem %s2000_s19, 8192  ;;  %p2002_p2 = scmp.lt.s32.totalorder %s2234_s9, %s2000_s19 }
  0x3a   : > { %p1997_p9 = pnand %p1995_p0, %p1955_p11  ;;  %p2003_p3 = scmp.lt.s32.totalorder %s2001_s25, %s1994_s22 }
  0x3c   : > { %p1998_p13 = pneg %p1997_p9  ;;  %p2004_p7 = por %p2003_p3, %p2002_p2 }
  0x3e   : > { %p2005_p5 = pnand %p2004_p7, %p1998_p13 }
  0x40   : > { %2008 = shalt.err (!%p2005_p5)
}
  0x41   : > { %1779 = dma.hbm_to_vmem [thread:$0]  (!%p2185_p8), %s2232_s7, 4096, %s2234_s9, %s156_s27, %s2106_s23, %s2106_s23, %s2107_s24  }
  0x42   : > { %179 = sbr.rel (%p2225_p1) target bundleno = 648 (0x288), region = 28 }
  0x47   : > { %s181_s26 = sand.u32 1, %s2095_s13   ;;  %p3412_p11 = scmp.ne.s32.totalorder %s3408_s21, 0 }
  0x48   : > { %s1744_s5 = sshll.u32 %s181_s26, 4  ;;  %s182_s6 = scalar_lea.sflag [#allocation3], %s181_s26 }
  0x49   : > { %s185_s8 = scalar_lea.vmem [#allocation2], %s1744_s5 }
  0x4a   : > { %2074 = dma.done.wait (%p3412_p11), %s182_s6, 256  }
  0x4b   : > { %2076 = vsyncadd (%p3412_p11), %s182_s6, 4294967040  ;;  %s1745_s30 = sshll.u32 %s181_s26, 8  ;;  %s191_s29 = scalar_lea.sflag [#allocation6], %s181_s26 }
  0x4c   : > { %s2269_s15 = scalar_lea.vmem [#allocation5], %s1745_s30 }
  0x4d   : > { %2078 = dma.done.wait (%p3412_p11), %s191_s29, 4096  }
  0x4e   : > { %2080 = vsyncadd (%p3412_p11), %s191_s29, 4294963200  ;;  %p1746_p7 = scmp.ne.s32.totalorder %s2152_s16, 0 }
  0x50   : > { %222 = sbr.rel (%p1746_p7) target bundleno = 87 (0x57), region = 40 }
  0x55   : > { %vm223_vm0 = vcmask 0   ;;  %v2109_v0 = vmov 0.0  }
  0x56   : > { %224 = vst.msk [vmem:[#allocation7] sm:$0x1] %vm223_vm0, %v2109_v0  ;;  %225 = vst.msk [vmem:[#allocation8] sm:$0x1] %vm223_vm0, %v2109_v0 }
  0x57 PF: > { %v266_v1 = vlaneseq  ;;  %v2110_v2 = vmov 1966171168   ;;  %v2279_v6 = vld [vmem:[%s185_s8 + $0x8] sm:$0xff]  ;;  %v226_v7 = vld [vmem:[%s185_s8] sm:$0xff]  ;;  %vm3372_vm1 = vcmask 130112   ;;  %vm3370_vm2 = vcmask 1041409  }
  0x58   : > { %v264_v3 = vunpack.c.l.s4 %v2110_v2  ;;  %v245_v15 = vld [vmem:[%s2269_s15 + $0x88] sm:$0xff]  ;;  %v228_v16 = vld [vmem:[%s2269_s15] sm:$0xff]  ;;  %v230_v22 = vld [vmem:[%s2269_s15 + $0x10] sm:$0xff]  ;;  %v262_v43 = vcombine.high %v226_v7, %v226_v7  ;;  %v311_v50 = vcombine.high %v2279_v6, %v2279_v6  ;;  %vm3368_vm3 = vcmask 1042434   ;;  %s1747_s21 = sshll.u32 %s2152_s16, 4  ;;  %s2111_s24 = smov [#allocation7]  }
  0x59   : > { %v2277_v4 = vshrl.u32 %v266_v1, 7  ;;  %v229_v21 = vld [vmem:[%s2269_s15 + $0x8] sm:$0xff]  ;;  %v244_v29 = vld [vmem:[%s2269_s15 + $0x80] sm:$0xff]  ;;  %v231_v30 = vld [vmem:[%s2269_s15 + $0x18] sm:$0xff]  ;;  %vm3365_vm4 = vcmask 1043459   ;;  %vm3362_vm5 = vcmask 1044484  }
  0x5a   : > { %v265_v5 = vunpack.c.0.s8 %v264_v3  ;;  %v246_v35 = vld [vmem:[%s2269_s15 + $0x90] sm:$0xff]  ;;  %v247_v36 = vld [vmem:[%s2269_s15 + $0x98] sm:$0xff]  ;;  %v232_v41 = vld [vmem:[%s2269_s15 + $0x20] sm:$0xff]  ;;  %vm3357_vm6 = vcmask 1045509   ;;  %vm3356_vm7 = vcmask 1046534   ;;  %vm3355_vm8 = vcmask 1047559  }
  0x5b   : > { %3413 = vst [vmem:[#allocation14_spill] sm:$0xff] %v2277_v4  ;;  %v2287_v10 = vsub.s32 0, %v2277_v4  ;;  %v233_v42 = vld [vmem:[%s2269_s15 + $0x28] sm:$0xff]  ;;  %v248_v47 = vld [vmem:[%s2269_s15 + $0xa0] sm:$0xff]  ;;  %v235_v56 = vld [vmem:[%s2269_s15 + $0x38] sm:$0xff]  ;;  %s1638_s28 = sshll.u32 %s2111_s24, 4  ;;  %s1639_s28 = int_to_ptr.vmem [resolvable:$true] %s1638_s28 }
  0x5c   : > { %v2282_v8 = vsub.s32 %v265_v5, %v2277_v4  ;;  %v249_v49 = vld [vmem:[%s2269_s15 + $0xa8] sm:$0xff]  ;;  %v234_v57 = vld [vmem:[%s2269_s15 + $0x30] sm:$0xff]  ;;  %v251_v63 = vld [vmem:[%s2269_s15 + $0xb8] sm:$0xff]  ;;  %s2112_s4 = smov [#allocation8]   ;;  %p1781_p8 = scmp.eq.s32.totalorder %s2152_s16, 2 }
  0x5d   : > { %v250_v0 = vld [vmem:[%s2269_s15 + $0xb0] sm:$0xff]  ;;  %s1649_s10 = sshll.u32 %s2112_s4, 4  ;;  %s2009_s11 = scalar_lea.vmem %s1639_s28, 16  ;;  %s1650_s10 = int_to_ptr.vmem [resolvable:$true] %s1649_s10 }
  0x5e   : > { %v318_v9 = vrot.slane %v2279_v6, %v2282_v8  ;;  %v269_v11 = vrot.slane %v226_v7, %v2282_v8  ;;  %v276_v52 = vrot.slane %v262_v43, %v2282_v8  ;;  %v325_v59 = vrot.slane %v311_v50, %v2282_v8  ;;  %p2010_p1 = scmp.ne.s32.totalorder %s1639_s28, %s2009_s11  ;;  %s2015_s12 = scalar_lea.vmem %s1639_s28, 32 }
  0x5f   : > { %p2016_p10 = scmp.lt.s32.totalorder %s1639_s28, %s1639_s28  ;;  %p2017_p12 = scmp.lt.s32.totalorder %s2015_s12, %s2009_s11 }
  0x60   : > { %v334_v12 = vrot.slane %v318_v9, %v2282_v8  ;;  %v285_v13 = vrot.slane %v269_v11, %v2282_v8  ;;  %v277_v14 = vcombine.high %v269_v11, %v269_v11  ;;  %v326_v20 = vcombine.high %v318_v9, %v318_v9  ;;  %v237_v9 = vld [vmem:[%s2269_s15 + $0x48] sm:$0xff]  ;;  %v236_v11 = vld [vmem:[%s2269_s15 + $0x40] sm:$0xff]  ;;  %p2011_p4 = pnand %p2010_p1, %p1781_p8 }
  0x61   : > { %v292_v58 = vrot.slane %v276_v52, %v2282_v8  ;;  %v341_v2 = vrot.slane %v325_v59, %v2282_v8  ;;  %v278_v3 = vcombine.high %v276_v52, %v276_v52  ;;  %v258_v52 = vld [vmem:[%s2269_s15 + $0xf0] sm:$0xff]  ;;  %p2018_p0 = por %p2017_p12, %p2016_p10 }
  0x62   : > { %v395_v17 = vrot.slane %v334_v12, %v2287_v10  ;;  %v363_v18 = vrot.slane %v285_v13, %v2287_v10  ;;  %v299_v19 = vrot.slane %v277_v14, %v2282_v8  ;;  %v348_v28 = vrot.slane %v326_v20, %v2282_v8  ;;  %p2012_p6 = pneg %p2011_p4 }
  0x63   : > { %v307_v31 = vcombine.high %v285_v13, %v285_v13  ;;  %v356_v37 = vcombine.high %v334_v12, %v334_v12  ;;  %v379_v7 = vrot.slane %v292_v58, %v2287_v10  ;;  %v411_v12 = vrot.slane %v341_v2, %v2287_v10 }
  0x64   : > { %v457_v23 = vmul.f32 %v395_v17, %v245_v15  ;;  %v440_v24 = vmul.f32 %v363_v18, %v228_v16  ;;  %v367_v25 = vrot.slane %v299_v19, %v2287_v10  ;;  %v441_v26 = vmul.f32 %v363_v18, %v229_v21  ;;  %v253_v16 = vld [vmem:[%s2269_s15 + $0xc8] sm:$0xff]  ;;  %v252_v18 = vld [vmem:[%s2269_s15 + $0xc0] sm:$0xff]  ;;  %p2019_p9 = pnand %p2018_p0, %p2012_p6 }
  0x65   : > { %v456_v32 = vmul.f32 %v395_v17, %v244_v29  ;;  %v399_v34 = vrot.slane %v348_v28, %v2287_v10  ;;  %v371_v40 = vrot.slane %v307_v31, %v2287_v10  ;;  %v403_v44 = vrot.slane %v356_v37, %v2287_v10  ;;  %v255_v29 = vld [vmem:[%s2269_s15 + $0xd8] sm:$0xff] }
  0x66   : > { %506 = vadd.xlane.f32.xlu1 %v457_v23  ;;  %472 = vadd.xlane.f32.xlu0 %v440_v24  ;;  %v442_v27 = vmul.f32 %v367_v25, %v230_v22  ;;  %v443_v33 = vmul.f32 %v367_v25, %v231_v30  ;;  %v309_v48 = vcombine.high %v299_v19, %v299_v19  ;;  %v239_v23 = vld [vmem:[%s2269_s15 + $0x58] sm:$0xff]  ;;  %v238_v24 = vld [vmem:[%s2269_s15 + $0x50] sm:$0xff] }
  0x67   : > { %v458_v38 = vmul.f32 %v399_v34, %v246_v35  ;;  %v459_v39 = vmul.f32 %v399_v34, %v247_v36  ;;  %v444_v45 = vmul.f32 %v371_v40, %v232_v41  ;;  %v445_v46 = vmul.f32 %v371_v40, %v233_v42  ;;  %v254_v30 = vld [vmem:[%s2269_s15 + $0xd0] sm:$0xff]  ;;  %v241_v34 = vld [vmem:[%s2269_s15 + $0x68] sm:$0xff]  ;;  %v240_v35 = vld [vmem:[%s2269_s15 + $0x60] sm:$0xff] }
  0x68   : > { %v460_v51 = vmul.f32 %v403_v44, %v248_v47  ;;  %v461_v53 = vmul.f32 %v403_v44, %v249_v49  ;;  %v375_v54 = vrot.slane %v309_v48, %v2287_v10  ;;  %v358_v55 = vcombine.high %v348_v28, %v348_v28  ;;  %v257_v40 = vld [vmem:[%s2269_s15 + $0xe8] sm:$0xff]  ;;  %v256_v41 = vld [vmem:[%s2269_s15 + $0xe0] sm:$0xff]  ;;  %v242_v47 = vld [vmem:[%s2269_s15 + $0x70] sm:$0xff] }
  0x69   : > { %v327_v13 = vcombine.high %v325_v59, %v325_v59  ;;  %v449_v14 = vmul.f32 %v379_v7, %v237_v9  ;;  %v448_v15 = vmul.f32 %v379_v7, %v236_v11  ;;  %v306_v17 = vrot.slane %v278_v3, %v2282_v8 }
  0x6a   : > { %474 = vadd.xlane.f32.xlu0 %v441_v26  ;;  %476 = vadd.xlane.f32.xlu1 %v442_v27  ;;  %v447_v60 = vmul.f32 %v375_v54, %v235_v56  ;;  %v446_v61 = vmul.f32 %v375_v54, %v234_v57  ;;  %v407_v62 = vrot.slane %v358_v55, %v2287_v10  ;;  %v2351_v55 = vand.u32 127, %v266_v1 }
  0x6b   : > { %v465_v19 = vmul.f32 %v411_v12, %v253_v16  ;;  %v464_v20 = vmul.f32 %v411_v12, %v252_v18  ;;  %v383_v21 = vrot.slane %v306_v17, %v2287_v10  ;;  %v355_v22 = vrot.slane %v327_v13, %v2282_v8 }
  0x6c   : > { %v463_v5 = vmul.f32 %v407_v62, %v251_v63  ;;  %v462_v6 = vmul.f32 %v407_v62, %v250_v0  ;;  %v308_v25 = vcombine.high %v292_v58, %v292_v58  ;;  %v357_v31 = vcombine.high %v341_v2, %v341_v2  ;;  %3414 = vst [vmem:[#allocation15_spill] sm:$0xff] %v2351_v55 }
  0x6d   : > { %v451_v26 = vmul.f32 %v383_v21, %v239_v23  ;;  %v450_v27 = vmul.f32 %v383_v21, %v238_v24  ;;  %v415_v28 = vrot.slane %v355_v22, %v2287_v10  ;;  %v359_v42 = vcombine.high %v355_v22, %v355_v22 }
  0x6e   : > { %504 = vadd.xlane.f32.xlu0 %v456_v32  ;;  %478 = vadd.xlane.f32.xlu1 %v443_v33  ;;  %v387_v33 = vrot.slane %v308_v25, %v2287_v10  ;;  %v419_v36 = vrot.slane %v357_v31, %v2287_v10  ;;  %v607_v56 = vadd.s32 4294967288, %v2351_v55  ;;  %v2359_v58 = vsub.s32 %v2351_v55, %v2277_v4 }
  0x6f   : > { %v467_v32 = vmul.f32 %v415_v28, %v255_v29  ;;  %v466_v8 = vmul.f32 %v415_v28, %v254_v30  ;;  %v423_v50 = vrot.slane %v359_v42, %v2287_v10  ;;  %vm3352_vm9 = vcmp.lt.s32.totalorder %v2351_v55, 6 }
  0x70   : > { %v453_v37 = vmul.f32 %v387_v33, %v241_v34  ;;  %v469_v43 = vmul.f32 %v419_v36, %v257_v40  ;;  %v468_v44 = vmul.f32 %v419_v36, %v256_v41  ;;  %v2355_v57 = vsub.s32 %v607_v56, %v2277_v4 }
  0x71   : > { %v470_v54 = vmul.f32 %v423_v50, %v258_v52 }
  0x72   : > { %508 = vadd.xlane.f32.xlu0 %v458_v38  ;;  %510 = vadd.xlane.f32.xlu1 %v459_v39  ;;  %v452_v38 = vmul.f32 %v387_v33, %v240_v35  ;;  %v310_v39 = vcombine.high %v306_v17, %v306_v17 }
  0x76   : > { %480 = vadd.xlane.f32.xlu0 %v444_v45  ;;  %482 = vadd.xlane.f32.xlu1 %v445_v46  ;;  %v391_v45 = vrot.slane %v310_v39, %v2287_v10  ;;  %v243_v46 = vld [vmem:[%s2269_s15 + $0x78] sm:$0xff] }
  0x78   : > { %v455_v48 = vmul.f32 %v391_v45, %v243_v46  ;;  %v454_v49 = vmul.f32 %v391_v45, %v242_v47 }
  0x7a   : > { %512 = vadd.xlane.f32.xlu0 %v460_v51  ;;  %514 = vadd.xlane.f32.xlu1 %v461_v53  ;;  %v259_v51 = vld [vmem:[%s2269_s15 + $0xf8] sm:$0xff] }
  0x7b   : > { %v471_v53 = vmul.f32 %v423_v50, %v259_v51 }
  0x7e   : > { %486 = vadd.xlane.f32.xlu1 %v447_v60  ;;  %484 = vadd.xlane.f32.xlu0 %v446_v61 }
  0x82   : > { %518 = vadd.xlane.f32.xlu1 %v463_v5  ;;  %516 = vadd.xlane.f32.xlu0 %v462_v6 }
  0x86   : > { %490 = vadd.xlane.f32.xlu1 %v449_v14  ;;  %488 = vadd.xlane.f32.xlu0 %v448_v15 }
  0x8a   : > { %522 = vadd.xlane.f32.xlu1 %v465_v19  ;;  %520 = vadd.xlane.f32.xlu0 %v464_v20 }
  0x8e   : > { %494 = vadd.xlane.f32.xlu1 %v451_v26  ;;  %492 = vadd.xlane.f32.xlu0 %v450_v27 }
  0x92   : > { %526 = vadd.xlane.f32.xlu1 %v467_v32  ;;  %524 = vadd.xlane.f32.xlu0 %v466_v8 }
  0x96   : > { %498 = vadd.xlane.f32.xlu1 %v453_v37  ;;  %496 = vadd.xlane.f32.xlu0 %v452_v38 }
  0x9a   : > { %530 = vadd.xlane.f32.xlu1 %v469_v43  ;;  %528 = vadd.xlane.f32.xlu0 %v468_v44 }
  0x9e   : > { %502 = vadd.xlane.f32.xlu1 %v455_v48  ;;  %500 = vadd.xlane.f32.xlu0 %v454_v49 }
  0xa2   : > { %534 = vadd.xlane.f32.xlu1 %v471_v53  ;;  %532 = vadd.xlane.f32.xlu0 %v470_v54 }
  0xef   : > { %v507_v10 = vpop.xlane.xlu1 %506  ;;  %v473_v59 = vpop.xlane.xlu0 %472 }
  0xf0   : > { %v556_v60 = vsub.f32 0.0, %v507_v10  ;;  %v684_v61 = vrot.slane %v507_v10, %v2355_v57  ;;  %v539_v62 = vsub.f32 0.0, %v473_v59  ;;  %v606_v63 = vrot.slane %v473_v59, %v2359_v58 }
  0xf1   : > { %v987_v0 = vand.u32 2147483647, %v507_v10  ;;  %v970_v13 = vand.u32 2147483647, %v473_v59 }
  0xf2   : > { %v883_v1 = vrot.slane %v556_v60, %v2355_v57  ;;  %v807_v2 = vrot.slane %v539_v62, %v2359_v58 }
  0xf3   : > { %v475_v3 = vpop.xlane.xlu0 %474  ;;  %v477_v5 = vpop.xlane.xlu1 %476  ;;  %v1019_v12 = vsub.f32 0.0, %v987_v0  ;;  %v1002_v26 = vsub.f32 0.0, %v970_v13 }
  0xf4   : > { %v540_v6 = vsub.f32 0.0, %v475_v3  ;;  %v611_v7 = vrot.slane %v475_v3, %v2355_v57  ;;  %v541_v9 = vsub.f32 0.0, %v477_v5  ;;  %v617_v11 = vrot.slane %v477_v5, %v2359_v58 }
  0xf5   : > { %v971_v22 = vand.u32 2147483647, %v475_v3  ;;  %v1068_v25 = vmul.f32 1.442695, %v1019_v12  ;;  %v972_v29 = vand.u32 2147483647, %v477_v5 }
  0xf6   : > { %v613_v14 = vsel %vm3372_vm1, %v611_v7, %v606_v63  ;;  %v811_v15 = vrot.slane %v540_v6, %v2355_v57  ;;  %v816_v16 = vrot.slane %v541_v9, %v2359_v58  ;;  %v1034_v41 = vmul.f32 1.442695, %v1002_v26 }
  0xf7   : > { %v505_v17 = vpop.xlane.xlu0 %504  ;;  %v479_v18 = vpop.xlane.xlu1 %478  ;;  %v1003_v37 = vsub.f32 0.0, %v971_v22  ;;  %1825 = vpow2.f32 %v1068_v25  ;;  %v1004_v45 = vsub.f32 0.0, %v972_v29 }
  0xf8   : > { %v812_v19 = vsel %vm3372_vm1, %v811_v15, %v807_v2  ;;  %v555_v20 = vsub.f32 0.0, %v505_v17  ;;  %v680_v21 = vrot.slane %v505_v17, %v2359_v58  ;;  %v542_v23 = vsub.f32 0.0, %v479_v18 }
  0xf9   : > { %v621_v24 = vrot.slane %v479_v18, %v2355_v57  ;;  %v986_v30 = vand.u32 2147483647, %v505_v17  ;;  %v973_v39 = vand.u32 2147483647, %v479_v18  ;;  %v1036_v54 = vmul.f32 1.442695, %v1003_v37 }
  0xfa   : > { %v685_v27 = vsel %vm3372_vm1, %v684_v61, %v680_v21  ;;  %v879_v28 = vrot.slane %v555_v20, %v2359_v58  ;;  %v820_v32 = vrot.slane %v542_v23, %v2355_v57  ;;  %1827 = vpow2.f32 %v1034_v41 }
  0xfb   : > { %v622_v31 = vsel %vm3372_vm1, %v621_v24, %v617_v11  ;;  %v509_v8 = vpop.xlane.xlu0 %508  ;;  %v511_v33 = vpop.xlane.xlu1 %510  ;;  %v1018_v46 = vsub.f32 0.0, %v986_v30  ;;  %v1005_v56 = vsub.f32 0.0, %v973_v39  ;;  %1829 = vpow2.f32 %v1036_v54 }
  0xfc   : > { %v884_v34 = vsel %vm3372_vm1, %v883_v1, %v879_v28  ;;  %v750_v35 = vsel %vm3370_vm2, %v622_v31, %v613_v14  ;;  %v557_v36 = vsub.f32 0.0, %v509_v8  ;;  %v821_v38 = vsel %vm3372_vm1, %v820_v32, %v816_v16 }
  0xfd   : > { %v689_v40 = vrot.slane %v509_v8, %v2359_v58  ;;  %v948_v42 = vsel %vm3370_vm2, %v821_v38, %v812_v19  ;;  %v558_v44 = vsub.f32 0.0, %v511_v33  ;;  %v693_v47 = vrot.slane %v511_v33, %v2355_v57 }
  0xfe   : > { %v888_v43 = vrot.slane %v557_v36, %v2359_v58  ;;  %v988_v50 = vand.u32 2147483647, %v509_v8  ;;  %v989_v59 = vand.u32 2147483647, %v511_v33  ;;  %v1038_v1 = vmul.f32 1.442695, %v1004_v45 }
  0xff   : > { %v481_v48 = vpop.xlane.xlu0 %480  ;;  %v483_v49 = vpop.xlane.xlu1 %482  ;;  %v892_v51 = vrot.slane %v558_v44, %v2355_v57  ;;  %v694_v10 = vsel %vm3372_vm1, %v693_v47, %v689_v40  ;;  %v1066_v0 = vmul.f32 1.442695, %v1018_v46  ;;  %v1040_v12 = vmul.f32 1.442695, %v1005_v56 }
 0x100   : > { %v543_v52 = vsub.f32 0.0, %v481_v48  ;;  %v626_v53 = vrot.slane %v481_v48, %v2359_v58  ;;  %v763_v60 = vsel %vm3370_vm2, %v694_v10, %v685_v27  ;;  %v544_v63 = vsub.f32 0.0, %v483_v49 }
 0x101   : > { %v893_v61 = vsel %vm3372_vm1, %v892_v51, %v888_v43  ;;  %v1020_v6 = vsub.f32 0.0, %v988_v50  ;;  %v630_v7 = vrot.slane %v483_v49, %v2355_v57  ;;  %v1021_v13 = vsub.f32 0.0, %v989_v59 }
 0x102   : > { %v825_v62 = vrot.slane %v543_v52, %v2359_v58  ;;  %v955_v2 = vsel %vm3370_vm2, %v893_v61, %v884_v34  ;;  %v829_v9 = vrot.slane %v544_v63, %v2355_v57  ;;  %v974_v15 = vand.u32 2147483647, %v481_v48 }
 0x103   : > { %v513_v3 = vpop.xlane.xlu0 %512  ;;  %v515_v5 = vpop.xlane.xlu1 %514  ;;  %v631_v16 = vsel %vm3372_vm1, %v630_v7, %v626_v53  ;;  %1831 = vpow2.f32 %v1038_v1  ;;  %v975_v21 = vand.u32 2147483647, %v483_v49  ;;  %v1070_v24 = vmul.f32 1.442695, %v1020_v6 }
 0x104   : > { %v559_v11 = vsub.f32 0.0, %v513_v3  ;;  %v698_v14 = vrot.slane %v513_v3, %v2359_v58  ;;  %v830_v17 = vsel %vm3372_vm1, %v829_v9, %v825_v62  ;;  %v752_v19 = vsel %vm3368_vm3, %v631_v16, %v750_v35  ;;  %v2409_v39 = vpop.eup %1825 }
 0x105   : > { %v949_v20 = vsel %vm3368_vm3, %v830_v17, %v948_v42  ;;  %1833 = vpow2.f32 %v1066_v0  ;;  %v560_v25 = vsub.f32 0.0, %v515_v5  ;;  %v702_v26 = vrot.slane %v515_v5, %v2355_v57 }
 0x106   : > { %v897_v18 = vrot.slane %v559_v11, %v2359_v58  ;;  %1835 = vpow2.f32 %v1040_v12  ;;  %v990_v27 = vand.u32 2147483647, %v513_v3  ;;  %v1072_v30 = vmul.f32 1.442695, %v1021_v13 }
 0x107   : > { %v487_v22 = vpop.xlane.xlu1 %486  ;;  %v2399_v23 = vpop.xlane.xlu0 %484  ;;  %v1006_v31 = vsub.f32 0.0, %v974_v15  ;;  %v703_v32 = vsel %vm3372_vm1, %v702_v26, %v698_v14  ;;  %v901_v8 = vrot.slane %v560_v25, %v2355_v57  ;;  %v1007_v33 = vsub.f32 0.0, %v975_v21 }
 0x108   : > { %v546_v28 = vsub.f32 0.0, %v487_v22  ;;  %v639_v29 = vrot.slane %v487_v22, %v2355_v57  ;;  %v764_v34 = vsel %vm3368_vm3, %v703_v32, %v763_v60  ;;  %v991_v35 = vand.u32 2147483647, %v515_v5  ;;  %v2420_v10 = vpop.eup %1827 }
 0x109   : > { %1837 = vpow2.f32 %v1070_v24  ;;  %v902_v40 = vsel %vm3372_vm1, %v901_v8, %v897_v18  ;;  %v545_v41 = vsub.f32 0.0, %v2399_v23  ;;  %v635_v42 = vrot.slane %v2399_v23, %v2359_v58  ;;  %v2428_v3 = vpop.eup %1829 }
 0x10a   : > { %v838_v36 = vrot.slane %v546_v28, %v2355_v57  ;;  %v1022_v43 = vsub.f32 0.0, %v990_v27  ;;  %v956_v44 = vsel %vm3368_vm3, %v902_v40, %v955_v2  ;;  %v977_v45 = vand.u32 2147483647, %v487_v22 }
 0x10b   : > { %v519_v37 = vpop.xlane.xlu1 %518  ;;  %v2407_v38 = vpop.xlane.xlu0 %516  ;;  %v1042_v47 = vmul.f32 1.442695, %v1006_v31  ;;  %v640_v48 = vsel %vm3372_vm1, %v639_v29, %v635_v42  ;;  %v834_v49 = vrot.slane %v545_v41, %v2359_v58  ;;  %1839 = vpow2.f32 %v1072_v30 }
 0x10c   : > { %v562_v46 = vsub.f32 0.0, %v519_v37  ;;  %v711_v50 = vrot.slane %v519_v37, %v2355_v57  ;;  %v1044_v51 = vmul.f32 1.442695, %v1007_v33  ;;  %v1023_v52 = vsub.f32 0.0, %v991_v35 }
 0x10d   : > { %v754_v53 = vsel %vm3365_vm4, %v640_v48, %v752_v19  ;;  %v839_v59 = vsel %vm3372_vm1, %v838_v36, %v834_v49  ;;  %v561_v61 = vsub.f32 0.0, %v2407_v38  ;;  %v707_v62 = vrot.slane %v2407_v38, %v2359_v58 }
 0x10e   : > { %v910_v60 = vrot.slane %v562_v46, %v2355_v57  ;;  %v1074_v63 = vmul.f32 1.442695, %v1022_v43  ;;  %v1009_v1 = vsub.f32 0.0, %v977_v45  ;;  %v950_v0 = vsel %vm3365_vm4, %v839_v59, %v949_v20 }
 0x10f   : > { %v491_v54 = vpop.xlane.xlu1 %490  ;;  %v489_v56 = vpop.xlane.xlu0 %488  ;;  %1841 = vpow2.f32 %v1042_v47  ;;  %v976_v5 = vand.u32 2147483647, %v2399_v23  ;;  %v712_v6 = vsel %vm3372_vm1, %v711_v50, %v707_v62  ;;  %v906_v7 = vrot.slane %v561_v61, %v2359_v58 }
 0x110   : > { %v548_v2 = vsub.f32 0.0, %v491_v54  ;;  %1843 = vpow2.f32 %v1044_v51  ;;  %v993_v9 = vand.u32 2147483647, %v519_v37  ;;  %v765_v11 = vsel %vm3365_vm4, %v712_v6, %v764_v34  ;;  %v2439_v15 = vpop.eup %1831 }
 0x111   : > { %v648_v12 = vrot.slane %v491_v54, %v2355_v57  ;;  %v1076_v16 = vmul.f32 1.442695, %v1023_v52  ;;  %v911_v17 = vsel %vm3372_vm1, %v910_v60, %v906_v7  ;;  %v547_v19 = vsub.f32 0.0, %v489_v56 }
 0x112   : > { %v847_v18 = vrot.slane %v548_v2, %v2355_v57  ;;  %v2443_v20 = vpop.eup %1833  ;;  %1845 = vpow2.f32 %v1074_v63  ;;  %v1048_v21 = vmul.f32 1.442695, %v1009_v1  ;;  %v957_v22 = vsel %vm3365_vm4, %v911_v17, %v956_v44 }
 0x113   : > { %v2435_v13 = vpop.xlane.xlu1 %522  ;;  %v2437_v14 = vpop.xlane.xlu0 %520  ;;  %v644_v23 = vrot.slane %v489_v56, %v2359_v58  ;;  %v1008_v25 = vsub.f32 0.0, %v976_v5  ;;  %v992_v26 = vand.u32 2147483647, %v2407_v38  ;;  %v843_v27 = vrot.slane %v547_v19, %v2359_v58 }
 0x114   : > { %v2447_v24 = vpop.eup %1835  ;;  %v564_v28 = vsub.f32 0.0, %v2435_v13  ;;  %v1025_v29 = vsub.f32 0.0, %v993_v9  ;;  %v979_v30 = vand.u32 2147483647, %v491_v54  ;;  %v978_v32 = vand.u32 2147483647, %v489_v56 }
 0x115   : > { %v649_v31 = vsel %vm3372_vm1, %v648_v12, %v644_v23  ;;  %1847 = vpow2.f32 %v1076_v16  ;;  %v848_v35 = vsel %vm3372_vm1, %v847_v18, %v843_v27  ;;  %v720_v36 = vrot.slane %v2435_v13, %v2355_v57 }
 0x116   : > { %v756_v34 = vsel %vm3362_vm5, %v649_v31, %v754_v53  ;;  %v2459_v37 = vpop.eup %1837  ;;  %1849 = vpow2.f32 %v1048_v21  ;;  %v951_v38 = vsel %vm3362_vm5, %v848_v35, %v950_v0  ;;  %v919_v40 = vrot.slane %v564_v28, %v2355_v57 }
 0x117   : > { %v495_v8 = vpop.xlane.xlu1 %494  ;;  %v2453_v33 = vpop.xlane.xlu0 %492  ;;  %v563_v41 = vsub.f32 0.0, %v2437_v14  ;;  %v1046_v42 = vmul.f32 1.442695, %v1008_v25  ;;  %v1024_v43 = vsub.f32 0.0, %v992_v26  ;;  %v716_v44 = vrot.slane %v2437_v14, %v2359_v58 }
 0x118   : > { %v550_v45 = vsub.f32 0.0, %v495_v8  ;;  %v1080_v46 = vmul.f32 1.442695, %v1025_v29  ;;  %v1011_v47 = vsub.f32 0.0, %v979_v30  ;;  %v1010_v48 = vsub.f32 0.0, %v978_v32  ;;  %v2471_v52 = vpop.eup %1839 }
 0x119   : > { %v915_v49 = vrot.slane %v563_v41, %v2359_v58  ;;  %v995_v53 = vand.u32 2147483647, %v2435_v13  ;;  %v721_v54 = vsel %vm3372_vm1, %v720_v36, %v716_v44  ;;  %v994_v56 = vand.u32 2147483647, %v2437_v14 }
 0x11a   : > { %v657_v59 = vrot.slane %v495_v8, %v2355_v57  ;;  %v766_v60 = vsel %vm3362_vm5, %v721_v54, %v765_v11  ;;  %v856_v62 = vrot.slane %v550_v45, %v2355_v57  ;;  %v549_v63 = vsub.f32 0.0, %v2453_v33 }
 0x11b   : > { %v2467_v50 = vpop.xlane.xlu1 %526  ;;  %v2469_v51 = vpop.xlane.xlu0 %524  ;;  %v920_v61 = vsel %vm3372_vm1, %v919_v40, %v915_v49  ;;  %1851 = vpow2.f32 %v1046_v42  ;;  %v1078_v1 = vmul.f32 1.442695, %v1024_v43  ;;  %v653_v2 = vrot.slane %v2453_v33, %v2359_v58 }
 0x11c   : > { %v958_v0 = vsel %vm3362_vm5, %v920_v61, %v957_v22  ;;  %v2484_v5 = vpop.eup %1841  ;;  %1853 = vpow2.f32 %v1080_v46  ;;  %v1052_v6 = vmul.f32 1.442695, %v1011_v47  ;;  %v852_v7 = vrot.slane %v549_v63, %v2359_v58 }
 0x11d   : > { %v566_v9 = vsub.f32 0.0, %v2467_v50  ;;  %v2492_v13 = vpop.eup %1843  ;;  %v1050_v14 = vmul.f32 1.442695, %v1010_v48  ;;  %v1027_v16 = vsub.f32 0.0, %v995_v53  ;;  %v981_v17 = vand.u32 2147483647, %v495_v8 }
 0x11e   : > { %v658_v18 = vsel %vm3372_vm1, %v657_v59, %v653_v2  ;;  %v1026_v19 = vsub.f32 0.0, %v994_v56  ;;  %v857_v22 = vsel %vm3372_vm1, %v856_v62, %v852_v7  ;;  %v729_v23 = vrot.slane %v2467_v50, %v2355_v57 }
 0x11f   : > { %v2488_v11 = vpop.xlane.xlu1 %498  ;;  %v2490_v12 = vpop.xlane.xlu0 %496  ;;  %v758_v21 = vsel %vm3357_vm6, %v658_v18, %v756_v34  ;;  %v952_v26 = vsel %vm3357_vm6, %v857_v22, %v951_v38  ;;  %v980_v27 = vand.u32 2147483647, %v2453_v33  ;;  %v928_v28 = vrot.slane %v566_v9, %v2355_v57 }
 0x120   : > { %v2499_v25 = vpop.eup %1845  ;;  %v565_v29 = vsub.f32 0.0, %v2469_v51  ;;  %1855 = vpow2.f32 %v1078_v1  ;;  %v725_v30 = vrot.slane %v2469_v51, %v2359_v58  ;;  %v552_v31 = vsub.f32 0.0, %v2488_v11 }
 0x121   : > { %1857 = vpow2.f32 %v1052_v6  ;;  %v1084_v8 = vmul.f32 1.442695, %v1027_v16  ;;  %v1013_v34 = vsub.f32 0.0, %v981_v17  ;;  %v666_v38 = vrot.slane %v2488_v11, %v2355_v57 }
 0x122   : > { %v924_v35 = vrot.slane %v565_v29, %v2359_v58  ;;  %v2511_v36 = vpop.eup %1847  ;;  %1859 = vpow2.f32 %v1050_v14  ;;  %v730_v33 = vsel %vm3372_vm1, %v729_v23, %v725_v30  ;;  %v1082_v42 = vmul.f32 1.442695, %v1026_v19 }
 0x123   : > { %v2508_v32 = vpop.xlane.xlu1 %530  ;;  %v2516_v40 = vpop.xlane.xlu0 %528  ;;  %v1012_v43 = vsub.f32 0.0, %v980_v27  ;;  %v767_v44 = vsel %vm3357_vm6, %v730_v33, %v766_v60  ;;  %v865_v47 = vrot.slane %v552_v31, %v2355_v57  ;;  %v551_v48 = vsub.f32 0.0, %v2490_v12 }
 0x124   : > { %v2518_v41 = vpop.eup %1849  ;;  %v929_v45 = vsel %vm3372_vm1, %v928_v28, %v924_v35  ;;  %v662_v49 = vrot.slane %v2490_v12, %v2359_v58  ;;  %1861 = vpow2.f32 %v1084_v8  ;;  %v1056_v53 = vmul.f32 1.442695, %v1013_v34 }
 0x125   : > { %v959_v46 = vsel %vm3357_vm6, %v929_v45, %v958_v0  ;;  %v997_v54 = vand.u32 2147483647, %v2467_v50  ;;  %v568_v56 = vsub.f32 0.0, %v2508_v32  ;;  %v996_v60 = vand.u32 2147483647, %v2469_v51 }
 0x126   : > { %v667_v61 = vsel %vm3372_vm1, %v666_v38, %v662_v49  ;;  %v861_v62 = vrot.slane %v551_v48, %v2359_v58  ;;  %v738_v63 = vrot.slane %v2508_v32, %v2355_v57  ;;  %1863 = vpow2.f32 %v1082_v42 }
 0x127   : > { %v2529_v59 = vpop.xlane.xlu1 %502  ;;  %v1054_v1 = vmul.f32 1.442695, %v1012_v43  ;;  %v760_v0 = vsel %vm3356_vm7, %v667_v61, %v758_v21  ;;  %v937_v6 = vrot.slane %v568_v56, %v2355_v57  ;;  %v567_v51 = vsub.f32 0.0, %v2516_v40  ;;  %v501_v9 = vpop.xlane.xlu0 %500 }
 0x128   : > { %v2537_v2 = vpop.eup %1851  ;;  %v866_v50 = vsel %vm3372_vm1, %v865_v47, %v861_v62  ;;  %v734_v7 = vrot.slane %v2516_v40, %v2359_v58  ;;  %1865 = vpow2.f32 %v1056_v53  ;;  %v1029_v16 = vsub.f32 0.0, %v997_v54 }
 0x129   : > { %v2544_v14 = vpop.eup %1853  ;;  %v953_v17 = vsel %vm3356_vm7, %v866_v50, %v952_v26  ;;  %v554_v18 = vsub.f32 0.0, %v2529_v59  ;;  %v1028_v19 = vsub.f32 0.0, %v996_v60  ;;  %v983_v21 = vand.u32 2147483647, %v2488_v11 }
 0x12a   : > { %v739_v22 = vsel %vm3372_vm1, %v738_v63, %v734_v7  ;;  %v933_v23 = vrot.slane %v567_v51, %v2359_v58  ;;  %1867 = vpow2.f32 %v1054_v1  ;;  %v982_v27 = vand.u32 2147483647, %v2490_v12 }
 0x12b   : > { %v768_v28 = vsel %vm3356_vm7, %v739_v22, %v767_v44  ;;  %v675_v29 = vrot.slane %v2529_v59, %v2355_v57  ;;  %v535_v26 = vpop.xlane.xlu1 %534  ;;  %v999_v30 = vand.u32 2147483647, %v2508_v32  ;;  %v874_v8 = vrot.slane %v554_v18, %v2355_v57  ;;  %v533_v47 = vpop.xlane.xlu0 %532 }
 0x12c   : > { %v938_v31 = vsel %vm3372_vm1, %v937_v6, %v933_v23  ;;  %v553_v11 = vsub.f32 0.0, %v501_v9  ;;  %v1088_v35 = vmul.f32 1.442695, %v1029_v16  ;;  %v998_v12 = vand.u32 2147483647, %v2516_v40 }
 0x12d   : > { %v2559_v34 = vpop.eup %1855  ;;  %v960_v33 = vsel %vm3356_vm7, %v938_v31, %v959_v46  ;;  %v671_v38 = vrot.slane %v501_v9, %v2359_v58  ;;  %v1086_v43 = vmul.f32 1.442695, %v1028_v19  ;;  %v1015_v44 = vsub.f32 0.0, %v983_v21 }
 0x12e   : > { %v2564_v42 = vpop.eup %1857  ;;  %v870_v32 = vrot.slane %v553_v11, %v2359_v58  ;;  %v570_v45 = vsub.f32 0.0, %v535_v26  ;;  %v1014_v49 = vsub.f32 0.0, %v982_v27  ;;  %v985_v53 = vand.u32 2147483647, %v2529_v59 }
 0x12f   : > { %v2567_v48 = vpop.eup %1859  ;;  %v676_v54 = vsel %vm3372_vm1, %v675_v29, %v671_v38  ;;  %v747_v46 = vrot.slane %v535_v26, %v2355_v57  ;;  %v1031_v40 = vsub.f32 0.0, %v999_v30  ;;  %v984_v61 = vand.u32 2147483647, %v501_v9 }
 0x130   : > { %v762_v56 = vsel %vm3355_vm8, %v676_v54, %v760_v0  ;;  %v875_v60 = vsel %vm3372_vm1, %v874_v8, %v870_v32  ;;  %v1030_v62 = vsub.f32 0.0, %v998_v12  ;;  %v946_v63 = vrot.slane %v570_v45, %v2355_v57 }
 0x131   : > { %v569_v1 = vsub.f32 0.0, %v533_v47  ;;  %v743_v50 = vrot.slane %v533_v47, %v2359_v58  ;;  %v2576_v6 = vpop.eup %1861  ;;  %1869 = vpow2.f32 %v1088_v35  ;;  %v1060_v59 = vmul.f32 1.442695, %v1015_v44 }
 0x132   : > { %v1001_v51 = vand.u32 2147483647, %v535_v26  ;;  %v954_v7 = vsel %vm3355_vm8, %v875_v60, %v953_v17  ;;  %v1058_v16 = vmul.f32 1.442695, %v1014_v49  ;;  %v1017_v18 = vsub.f32 0.0, %v985_v53 }
 0x133   : > { %v748_v0 = vsel %vm3372_vm1, %v747_v46, %v743_v50  ;;  %v942_v19 = vrot.slane %v569_v1, %v2359_v58  ;;  %v2581_v9 = vpop.eup %1863  ;;  %v1092_v21 = vmul.f32 1.442695, %v1031_v40  ;;  %v1016_v22 = vsub.f32 0.0, %v984_v61 }
 0x134   : > { %v769_v23 = vsel %vm3355_vm8, %v748_v0, %v768_v28  ;;  %v964_v27 = vsel %vm3352_vm9, %v762_v56, %v954_v7  ;;  %1871 = vpow2.f32 %v1086_v43  ;;  %v1090_v29 = vmul.f32 1.442695, %v1030_v62 }
 0x135   : > { %v947_v26 = vsel %vm3372_vm1, %v946_v63, %v942_v19  ;;  %v1000_v17 = vand.u32 2147483647, %v533_v47  ;;  %v2587_v30 = vpop.eup %1865  ;;  %1873 = vpow2.f32 %v1060_v59  ;;  %v1033_v31 = vsub.f32 0.0, %v1001_v51 }
 0x136   : > { %v961_v8 = vsel %vm3355_vm8, %v947_v26, %v960_v33  ;;  %v1098_v11 = vadd.f32 1.0, %v2420_v10  ;;  %1875 = vpow2.f32 %v1058_v16  ;;  %v1064_v35 = vmul.f32 1.442695, %v1017_v18 }
 0x137   : > { %v2593_v28 = vsel %vm3352_vm9, %v769_v23, %v961_v8  ;;  %v2595_v12 = vpop.eup %1867  ;;  %1877 = vpow2.f32 %v1092_v21  ;;  %v1062_v38 = vmul.f32 1.442695, %v1016_v22  ;;  %v1032_v43 = vsub.f32 0.0, %v1000_v17 }
 0x138   : > { %3415 = vst [vmem:[#allocation16_spill] sm:$0xff] %v2593_v28  ;;  %1879 = vpow2.f32 %v1090_v29  ;;  %v1107_v44 = vadd.f32 1.0, %v2428_v3  ;;  %v1096_v32 = vmul.f32 1.442695, %v1033_v31  ;;  %v1116_v33 = vadd.f32 1.0, %v2439_v15 }
 0x139   : > { %1881 = vlog2.f32 %v1098_v11  ;;  %v1125_v45 = vadd.f32 1.0, %v2447_v24  ;;  %v1094_v47 = vmul.f32 1.442695, %v1032_v43  ;;  %v966_v49 = vsub.f32 0.0, %v964_v27 }
 0x13a   : > { %1883 = vpow2.f32 %v1064_v35  ;;  %v1101_v53 = vmul.f32 -0.5, %v2420_v10  ;;  %v1134_v54 = vadd.f32 1.0, %v2484_v5  ;;  %v1110_v40 = vmul.f32 -0.5, %v2428_v3 }
 0x13b   : > { %1885 = vpow2.f32 %v1062_v38  ;;  %v1119_v56 = vmul.f32 -0.5, %v2439_v15  ;;  %v1143_v60 = vadd.f32 1.0, %v2492_v13  ;;  %v1104_v61 = vand.u32 2147483647, %v2420_v10 }
 0x13c   : > { %1887 = vlog2.f32 %v1107_v44  ;;  %v1152_v62 = vadd.f32 1.0, %v2537_v2  ;;  %v2611_v1 = vmax.f32 %v966_v49, 0.0  ;;  %v1102_v50 = vadd.f32 1.0, %v1101_v53 }
 0x13d   : > { %1889 = vpow2.f32 %v1096_v32  ;;  %v1111_v51 = vadd.f32 1.0, %v1110_v40  ;;  %v1120_v7 = vadd.f32 1.0, %v1119_v56  ;;  %v1128_v16 = vmul.f32 -0.5, %v2447_v24 }
 0x13e   : > { %v2602_v46 = vpop.eup %1869  ;;  %1891 = vlog2.f32 %v1116_v33  ;;  %3416 = vst [vmem:[#allocation17_spill] sm:$0xff] %v2611_v1  ;;  %v1113_v19 = vand.u32 2147483647, %v2428_v3  ;;  %v1137_v21 = vmul.f32 -0.5, %v2484_v5  ;;  %v1161_v22 = vadd.f32 1.0, %v2518_v41 }
 0x13f   : > { %1893 = vlog2.f32 %v1125_v45  ;;  %vm2624_vm10 = vcmp.lt.f32.partialorder %v1104_v61, 0.0004427343  ;;  %v1146_v29 = vmul.f32 -0.5, %v2492_v13  ;;  %v1170_v26 = vadd.f32 1.0, %v2567_v48 }
 0x140   : > { %1895 = vpow2.f32 %v1094_v47  ;;  %v2633_v31 = vmul.f32 %v2420_v10, %v1102_v50  ;;  %v1122_v8 = vand.u32 2147483647, %v2439_v15  ;;  %v1155_v11 = vmul.f32 -0.5, %v2537_v2 }
 0x141   : > { %v2609_v63 = vpop.eup %1871  ;;  %1897 = vlog2.f32 %v1134_v54  ;;  %v1179_v35 = vadd.f32 1.0, %v2564_v42  ;;  %v2639_v43 = vmul.f32 %v2428_v3, %v1111_v51  ;;  %v2642_v44 = vmul.f32 %v2439_v15, %v1120_v7 }
 0x142   : > { %v2613_v59 = vpop.eup %1873  ;;  %1899 = vlog2.f32 %v1143_v60  ;;  %v1129_v32 = vadd.f32 1.0, %v1128_v16  ;;  %v1131_v33 = vand.u32 2147483647, %v2447_v24  ;;  %vm2647_vm11 = vcmp.lt.f32.partialorder %v1113_v19, 0.0004427343 }
 0x143   : > { %v2616_v18 = vpop.eup %1875  ;;  %1901 = vlog2.f32 %v1152_v62  ;;  %v1138_v47 = vadd.f32 1.0, %v1137_v21  ;;  %v1164_v49 = vmul.f32 -0.5, %v2518_v41  ;;  %v1188_v53 = vadd.f32 1.0, %v2595_v12 }
 0x144   : > { %v2622_v23 = vpop.eup %1877  ;;  %1903 = vlog2.f32 %v1161_v22  ;;  %v1140_v15 = vand.u32 2147483647, %v2484_v5  ;;  %v1147_v54 = vadd.f32 1.0, %v1146_v29  ;;  %v1173_v40 = vmul.f32 -0.5, %v2567_v48 }
 0x145   : > { %v2630_v17 = vpop.eup %1879  ;;  %1905 = vlog2.f32 %v1170_v26  ;;  %vm2659_vm12 = vcmp.lt.f32.partialorder %v1122_v8, 0.0004427343  ;;  %v1149_v62 = vand.u32 2147483647, %v2492_v13  ;;  %v1156_v50 = vadd.f32 1.0, %v1155_v11 }
 0x146   : > { %v1882_v38 = vpop.eup %1881  ;;  %1907 = vlog2.f32 %v1179_v35  ;;  %v2667_v7 = vmul.f32 %v2447_v24, %v1129_v32  ;;  %vm2669_vm13 = vcmp.lt.f32.partialorder %v1131_v33, 0.0004427343  ;;  %v1182_v19 = vmul.f32 -0.5, %v2564_v42 }
 0x147   : > { %v2645_v45 = vpop.eup %1883  ;;  %v2657_v60 = vmul.f32 0.6931472, %v1882_v38  ;;  %1909 = vlog2.f32 %v1188_v53  ;;  %v1197_v21 = vadd.f32 1.0, %v2587_v30  ;;  %v2676_v29 = vmul.f32 %v2484_v5, %v1138_v47 }
 0x148   : > { %v2653_v3 = vpop.eup %1885  ;;  %v1158_v26 = vand.u32 2147483647, %v2537_v2  ;;  %v1165_v8 = vadd.f32 1.0, %v1164_v49  ;;  %v1206_v11 = vadd.f32 1.0, %v2616_v18  ;;  %vm2682_vm14 = vcmp.lt.f32.partialorder %v1140_v15, 0.0004427343 }
 0x149   : > { %v1888_v56 = vpop.eup %1887  ;;  %3425 = vst [vmem:[#allocation18_spill] sm:$0xff] %v2676_v29  ;;  %v3427_v38 = vmov 0  ;;  %v2687_v32 = vmul.f32 %v2492_v13, %v1147_v54  ;;  %v1174_v33 = vadd.f32 1.0, %v1173_v40  ;;  %v1191_v53 = vmul.f32 -0.5, %v2595_v12 }
 0x14a   : > { %v2664_v51 = vpop.eup %1889  ;;  %v2680_v35 = vmul.f32 0.6931472, %v1888_v56  ;;  %v3428_v38 = vsel %vm2682_vm14, 4294967295, %v3427_v38  ;;  %vm2696_vm15 = vcmp.lt.f32.partialorder %v1149_v62, 0.0004427343  ;;  %v2701_v15 = vmul.f32 %v2537_v2, %v1156_v50 }
 0x14b   : > { %v1892_v22 = vpop.eup %1891  ;;  %3429 = vst [vmem:[#allocation20_spill] sm:$0xff] %v3428_v38  ;;  %3430 = vst [vmem:[#allocation21_spill] sm:$0xff] %v2687_v32  ;;  %v1167_v13 = vand.u32 2147483647, %v2518_v41  ;;  %1911 = vlog2.f32 %v1197_v21  ;;  %v1176_v56 = vand.u32 2147483647, %v2567_v48  ;;  %v2715_v2 = vmul.f32 %v2518_v41, %v1165_v8 }
 0x14c   : > { %v1894_v24 = vpop.eup %1893  ;;  %3426 = vst [vmem:[#allocation19_spill] sm:$0xff] %v2680_v35  ;;  %3433 = vst [vmem:[#allocation22_spill] sm:$0xff] %v2701_v15  ;;  %v2704_v40 = vmul.f32 0.6931472, %v1892_v22  ;;  %v1183_v0 = vadd.f32 1.0, %v1182_v19  ;;  %v1215_v55 = vadd.f32 1.0, %v2613_v59  ;;  %1913 = vlog2.f32 %v1206_v11 }
 0x14d   : > { %v2690_v5 = vpop.eup %1895  ;;  %v2708_v47 = vmul.f32 0.6931472, %v1894_v24  ;;  %vm2710_vm0 = vcmp.lt.f32.partialorder %v1158_v26, 0.0004427343  ;;  %v1200_v50 = vmul.f32 -0.5, %v2587_v30  ;;  %v2723_v21 = vmul.f32 %v2567_v48, %v1174_v33 }
 0x14e   : > { %v1898_v54 = vpop.eup %1897  ;;  %3434 = vst [vmem:[#allocation23_spill] sm:$0xff] %v2704_v40  ;;  %v1185_v22 = vand.u32 2147483647, %v2564_v42  ;;  %v1192_v26 = vadd.f32 1.0, %v1191_v53  ;;  %v1194_v41 = vand.u32 2147483647, %v2595_v12  ;;  %v2742_v33 = vmul.f32 %v2564_v42, %v1183_v0 }
 0x14f   : > { %v1900_v1 = vpop.eup %1899  ;;  %3435 = vst [vmem:[#allocation24_spill] sm:$0xff] %v2708_v47  ;;  %3438 = vst [vmem:[#allocation25_spill] sm:$0xff] %v2723_v21  ;;  %v2726_v28 = vmul.f32 0.6931472, %v1898_v54  ;;  %v1209_v8 = vmul.f32 -0.5, %v2616_v18  ;;  %v1224_v11 = vadd.f32 1.0, %v2653_v3  ;;  %1915 = vlog2.f32 %v1215_v55 }
 0x150   : > { %v1902_v24 = vpop.eup %1901  ;;  %v2735_v4 = vmul.f32 0.6931472, %v1900_v1  ;;  %vm2737_vm9 = vcmp.lt.f32.partialorder %v1167_v13, 0.0004427343  ;;  %3443 = vst [vmem:[#allocation28_spill] sm:$0xff] %v2742_v33  ;;  %v1201_v54 = vadd.f32 1.0, %v1200_v50  ;;  %v2757_v42 = vmul.f32 %v2595_v12, %v1192_v26 }
 0x151   : > { %3439 = vst [vmem:[#allocation26_spill] sm:$0xff] %v2726_v28  ;;  %v1203_v35 = vand.u32 2147483647, %v2587_v30  ;;  %v1218_v19 = vmul.f32 -0.5, %v2613_v59  ;;  %v1904_v1 = vpop.eup %1903  ;;  %v2750_v40 = vmul.f32 0.6931472, %v1902_v24  ;;  %1917 = vlog2.f32 %v1224_v11 }
 0x152   : > { %3440 = vst [vmem:[#allocation27_spill] sm:$0xff] %v2735_v4  ;;  %vm2752_vm8 = vcmp.lt.f32.partialorder %v1176_v56, 0.0004427343  ;;  %3447 = vst [vmem:[#allocation30_spill] sm:$0xff] %v2757_v42  ;;  %v1233_v55 = vadd.f32 1.0, %v2645_v45  ;;  %v1906_v0 = vpop.eup %1905  ;;  %v3448_v53 = vmov 0 }
 0x153   : > { %3444 = vst [vmem:[#allocation29_spill] sm:$0xff] %v2750_v40  ;;  %vm2764_vm7 = vcmp.lt.f32.partialorder %v1185_v22, 0.0004427343  ;;  %vm2768_vm6 = vcmp.lt.f32.partialorder %v1194_v41, 0.0004427343  ;;  %v3451_v56 = vmov 0  ;;  %v1908_v11 = vpop.eup %1907 }
 0x154   : > { %v3449_v53 = vsel %vm2764_vm7, 4294967295, %v3448_v53  ;;  %v3452_v56 = vsel %vm2768_vm6, 4294967295, %v3451_v56  ;;  %v1210_v24 = vadd.f32 1.0, %v1209_v8  ;;  %v1227_v12 = vmul.f32 -0.5, %v2653_v3  ;;  %v1910_v41 = vpop.eup %1909 }
 0x155   : > { %3450 = vst [vmem:[#allocation31_spill] sm:$0xff] %v3449_v53  ;;  %3453 = vst [vmem:[#allocation32_spill] sm:$0xff] %v3452_v56  ;;  %v1242_v26 = vadd.f32 1.0, %v2443_v20  ;;  %v1212_v22 = vand.u32 2147483647, %v2616_v18  ;;  %1919 = vlog2.f32 %v1233_v55  ;;  %v1236_v50 = vmul.f32 -0.5, %v2645_v45 }
 0x156   : > { %v2780_v28 = vmul.f32 0.6931472, %v1904_v1  ;;  %v2783_v8 = vmul.f32 %v2587_v30, %v1201_v54  ;;  %v1219_v29 = vadd.f32 1.0, %v1218_v19  ;;  %vm2789_vm5 = vcmp.lt.f32.partialorder %v1203_v35, 0.0004427343  ;;  %v3515_v10 = vld [vmem:[#allocation24_spill] sm:$0xff] }
 0x157   : > { %1921 = vlog2.f32 %v1242_v26  ;;  %v3455_v38 = vmov 0  ;;  %v1221_v55 = vand.u32 2147483647, %v2613_v59  ;;  %v1245_v4 = vmul.f32 -0.5, %v2443_v20  ;;  %v3532_v62 = vld [vmem:[#allocation25_spill] sm:$0xff] }
 0x158   : > { %3454 = vst [vmem:[#allocation33_spill] sm:$0xff] %v2783_v8  ;;  %v3456_v38 = vsel %vm2789_vm5, 4294967295, %v3455_v38  ;;  %v1251_v1 = vadd.f32 1.0, %v2409_v39  ;;  %v2796_v32 = vmul.f32 0.6931472, %v1906_v0  ;;  %v2799_v30 = vmul.f32 %v2616_v18, %v1210_v24  ;;  %v1912_v26 = vpop.eup %1911 }
 0x159   : > { %3457 = vst [vmem:[#allocation34_spill] sm:$0xff] %v3456_v38  ;;  %v1228_v19 = vadd.f32 1.0, %v1227_v12  ;;  %v1260_v54 = vadd.f32 1.0, %v2459_v37  ;;  %v2802_v47 = vmul.f32 0.6931472, %v1908_v11  ;;  %v3461_v40 = vmov 0  ;;  %v1914_v12 = vpop.eup %1913 }
 0x15a   : > { %3458 = vst [vmem:[#allocation35_spill] sm:$0xff] %v2796_v32  ;;  %v2804_v35 = vmul.f32 0.6931472, %v1910_v41  ;;  %vm2806_vm4 = vcmp.lt.f32.partialorder %v1212_v22, 0.0004427343  ;;  %v1237_v15 = vadd.f32 1.0, %v1236_v50  ;;  %1923 = vlog2.f32 %v1251_v1 }
 0x15b   : > { %3459 = vst [vmem:[#allocation36_spill] sm:$0xff] %v2802_v47  ;;  %v3462_v40 = vsel %vm2806_vm4, 4294967295, %v3461_v40  ;;  %v2815_v0 = vmul.f32 %v2613_v59, %v1219_v29  ;;  %v1230_v24 = vand.u32 2147483647, %v2653_v3  ;;  %1925 = vlog2.f32 %v1260_v54  ;;  %v3524_v16 = vld [vmem:[#allocation27_spill] sm:$0xff]  ;;  %v3544_v13 = vld [vmem:[#allocation30_spill] sm:$0xff] }
 0x15c   : > { %3460 = vst [vmem:[#allocation37_spill] sm:$0xff] %v2804_v35  ;;  %3463 = vst [vmem:[#allocation38_spill] sm:$0xff] %v3462_v40  ;;  %v1239_v11 = vand.u32 2147483647, %v2645_v45  ;;  %v1246_v22 = vadd.f32 1.0, %v1245_v4  ;;  %v1254_v41 = vmul.f32 -0.5, %v2409_v39  ;;  %v2832_v29 = vmul.f32 %v2653_v3, %v1228_v19  ;;  %v1916_v1 = vpop.eup %1915 }
 0x15d   : > { %v1269_v50 = vadd.f32 1.0, %v2471_v52  ;;  %v2825_v18 = vmul.f32 0.6931472, %v1912_v26  ;;  %vm2827_vm3 = vcmp.lt.f32.partialorder %v1221_v55, 0.0004427343  ;;  %v3465_v59 = vmov 0 }
 0x15e   : > { %v3466_v59 = vsel %vm2827_vm3, 4294967295, %v3465_v59  ;;  %v1248_v4 = vand.u32 2147483647, %v2443_v20  ;;  %v2844_v55 = vmul.f32 %v2645_v45, %v1237_v15  ;;  %v2846_v32 = vmul.f32 0.6931472, %v1914_v12 }
 0x15f   : > { %3464 = vst [vmem:[#allocation39_spill] sm:$0xff] %v2825_v18  ;;  %1927 = vlog2.f32 %v1269_v50  ;;  %vm2848_vm2 = vcmp.lt.f32.partialorder %v1230_v24, 0.0004427343  ;;  %v3468_v3 = vmov 0  ;;  %v1263_v19 = vmul.f32 -0.5, %v2459_v37  ;;  %v1918_v50 = vpop.eup %1917 }
 0x160   : > { %3467 = vst [vmem:[#allocation40_spill] sm:$0xff] %v2844_v55  ;;  %v3469_v3 = vsel %vm2848_vm2, 4294967295, %v3468_v3  ;;  %v1272_v54 = vmul.f32 -0.5, %v2471_v52  ;;  %v1278_v47 = vadd.f32 1.0, %v2499_v25  ;;  %vm2855_vm1 = vcmp.lt.f32.partialorder %v1239_v11, 0.0004427343 }
 0x161   : > { %v3470_v56 = vmov 0  ;;  %v2860_v45 = vmul.f32 %v2443_v20, %v1246_v22  ;;  %v1255_v15 = vadd.f32 1.0, %v1254_v41  ;;  %v1257_v12 = vand.u32 2147483647, %v2409_v39 }
 0x162   : > { %v3471_v56 = vsel %vm2855_vm1, 4294967295, %v3470_v56  ;;  %v1287_v24 = vadd.f32 1.0, %v2511_v36  ;;  %vm2868_vm6 = vcmp.lt.f32.partialorder %v1248_v4, 0.0004427343  ;;  %v3474_v35 = vmov 0  ;;  %v1920_v42 = vpop.eup %1919 }
 0x163   : > { %3472 = vst [vmem:[#allocation41_spill] sm:$0xff] %v3471_v56  ;;  %3473 = vst [vmem:[#allocation42_spill] sm:$0xff] %v2860_v45  ;;  %v3475_v35 = vsel %vm2868_vm6, 4294967295, %v3474_v35  ;;  %1929 = vlog2.f32 %v1278_v47  ;;  %v1281_v11 = vmul.f32 -0.5, %v2499_v25  ;;  %v2873_v20 = vmul.f32 0.6931472, %v1916_v1 }
 0x164   : > { %v1266_v22 = vand.u32 2147483647, %v2459_v37  ;;  %1931 = vlog2.f32 %v1287_v24  ;;  %v1290_v41 = vmul.f32 -0.5, %v2511_v36  ;;  %v1264_v4 = vadd.f32 1.0, %v1263_v19  ;;  %v1922_v47 = vpop.eup %1921 }
 0x165   : > { %v1273_v18 = vadd.f32 1.0, %v1272_v54  ;;  %v1296_v8 = vadd.f32 1.0, %v2559_v34  ;;  %v2882_v38 = vmul.f32 0.6931472, %v1918_v50  ;;  %v2885_v1 = vmul.f32 %v2409_v39, %v1255_v15 }
 0x166   : > { %v1299_v24 = vmul.f32 -0.5, %v2559_v34  ;;  %v1305_v33 = vadd.f32 1.0, %v2544_v14  ;;  %v2889_v53 = vmul.f32 0.6931472, %v1920_v42  ;;  %v1275_v21 = vand.u32 2147483647, %v2471_v52 }
 0x167   : > { %3476 = vst [vmem:[#allocation43_spill] sm:$0xff] %v2882_v38  ;;  %3477 = vst [vmem:[#allocation44_spill] sm:$0xff] %v2885_v1  ;;  %v1282_v40 = vadd.f32 1.0, %v1281_v11  ;;  %1933 = vlog2.f32 %v1296_v8  ;;  %v2896_v19 = vmul.f32 0.6931472, %v1922_v47  ;;  %v3480_v39 = vmov 0  ;;  %v1924_v50 = vpop.eup %1923 }
 0x168   : > { %3478 = vst [vmem:[#allocation45_spill] sm:$0xff] %v2889_v53  ;;  %vm2898_vm4 = vcmp.lt.f32.partialorder %v1257_v12, 0.0004427343  ;;  %vm2902_vm5 = vcmp.lt.f32.partialorder %v1266_v22, 0.0004427343  ;;  %v3483_v15 = vmov 0  ;;  %1935 = vlog2.f32 %v1305_v33  ;;  %v1926_v54 = vpop.eup %1925 }
 0x169   : > { %3479 = vst [vmem:[#allocation46_spill] sm:$0xff] %v2896_v19  ;;  %v3481_v39 = vsel %vm2898_vm4, 4294967295, %v3480_v39  ;;  %v3484_v15 = vsel %vm2902_vm5, 4294967295, %v3483_v15  ;;  %v1291_v42 = vadd.f32 1.0, %v1290_v41  ;;  %v2907_v8 = vmul.f32 %v2459_v37, %v1264_v4 }
 0x16a   : > { %3482 = vst [vmem:[#allocation47_spill] sm:$0xff] %v3481_v39  ;;  %v2910_v11 = vmul.f32 %v2471_v52, %v1273_v18  ;;  %v1284_v47 = vand.u32 2147483647, %v2499_v25  ;;  %v1308_v12 = vmul.f32 -0.5, %v2544_v14  ;;  %v1293_v41 = vand.u32 2147483647, %v2511_v36 }
 0x16b   : > { %v1300_v33 = vadd.f32 1.0, %v1299_v24  ;;  %v1314_v26 = vadd.f32 1.0, %v2581_v9  ;;  %vm2924_vm3 = vcmp.lt.f32.partialorder %v1275_v21, 0.0004427343  ;;  %v3485_v52 = vmov 0 }
 0x16c   : > { %v3486_v52 = vsel %vm2924_vm3, 4294967295, %v3485_v52  ;;  %v2929_v18 = vmul.f32 %v2499_v25, %v1282_v40  ;;  %v1302_v4 = vand.u32 2147483647, %v2559_v34  ;;  %v1317_v22 = vmul.f32 -0.5, %v2581_v9  ;;  %v1928_v21 = vpop.eup %1927 }
 0x16d   : > { %3487 = vst [vmem:[#allocation48_spill] sm:$0xff] %v3486_v52  ;;  %v2937_v38 = vmul.f32 0.6931472, %v1924_v50  ;;  %v2940_v37 = vmul.f32 %v2511_v36, %v1291_v42  ;;  %1937 = vlog2.f32 %v1314_v26  ;;  %v2942_v53 = vmul.f32 0.6931472, %v1926_v54 }
 0x16e   : > { %vm2944_vm1 = vcmp.lt.f32.partialorder %v1284_v47, 0.0004427343  ;;  %v1309_v40 = vadd.f32 1.0, %v1308_v12  ;;  %v1323_v55 = vadd.f32 1.0, %v2576_v6  ;;  %v1326_v56 = vmul.f32 -0.5, %v2576_v6 }
 0x16f   : > { %3488 = vst [vmem:[#allocation49_spill] sm:$0xff] %v2937_v38  ;;  %3489 = vst [vmem:[#allocation50_spill] sm:$0xff] %v2942_v53  ;;  %vm2950_vm2 = vcmp.lt.f32.partialorder %v1293_v41, 0.0004427343  ;;  %v3492_v24 = vmov 0  ;;  %v2955_v36 = vmul.f32 %v2559_v34, %v1300_v33  ;;  %v1332_v42 = vadd.f32 1.0, %v2609_v63 }
 0x170   : > { %v3493_v24 = vsel %vm2950_vm2, 4294967295, %v3492_v24  ;;  %v1311_v26 = vand.u32 2147483647, %v2544_v14  ;;  %v1320_v54 = vand.u32 2147483647, %v2581_v9  ;;  %v1318_v50 = vadd.f32 1.0, %v1317_v22  ;;  %v1930_v34 = vpop.eup %1929 }
 0x171   : > { %1939 = vlog2.f32 %v1323_v55  ;;  %v1335_v47 = vmul.f32 -0.5, %v2609_v63  ;;  %v3494_v12 = vsel %vm2624_vm10, %v2633_v31, %v2657_v60  ;;  %v2969_v33 = vmul.f32 0.6931472, %v1928_v21  ;;  %v1932_v22 = vpop.eup %1931 }
 0x172   : > { %v2967_v41 = vrot.slane %v3494_v12, %v2359_v58  ;;  %vm2971_vm6 = vcmp.lt.f32.partialorder %v1302_v4, 0.0004427343  ;;  %v3495_v19 = vmov 0  ;;  %v1327_v45 = vadd.f32 1.0, %v1326_v56 }
 0x173   : > { %v3496_v19 = vsel %vm2971_vm6, 4294967295, %v3495_v19  ;;  %1941 = vlog2.f32 %v1332_v42  ;;  %v1341_v55 = vadd.f32 1.0, %v2602_v46  ;;  %v2985_v60 = vmul.f32 %v2544_v14, %v1309_v40 }
 0x174   : > { %v1329_v4 = vand.u32 2147483647, %v2576_v6  ;;  %v2988_v56 = vmul.f32 0.6931472, %v1930_v34  ;;  %vm2990_vm10 = vcmp.lt.f32.partialorder %v1311_v26, 0.0004427343  ;;  %v1934_v26 = vpop.eup %1933  ;;  %v3530_v49 = vsel %vm2737_vm9, %v2715_v2, %v2780_v28 }
 0x175   : > { %v1336_v42 = vadd.f32 1.0, %v1335_v47  ;;  %1943 = vlog2.f32 %v1341_v55  ;;  %v1344_v12 = vmul.f32 -0.5, %v2602_v46  ;;  %v2995_v27 = vmul.f32 0.6931472, %v1932_v22  ;;  %v1936_v31 = vpop.eup %1935 }
 0x176   : > { %vm2997_vm4 = vcmp.lt.f32.partialorder %v1320_v54, 0.0004427343  ;;  %v1338_v14 = vand.u32 2147483647, %v2609_v63  ;;  %v1350_v40 = vadd.f32 1.0, %v2630_v17  ;;  %v1353_v34 = vmul.f32 -0.5, %v2630_v17 }
 0x177   : > { %3499 = vst [vmem:[#allocation51_spill] sm:$0xff] %v2995_v27  ;;  %v3009_v55 = vmul.f32 %v2581_v9, %v1318_v50  ;;  %v3012_v54 = vmul.f32 %v2576_v6, %v1327_v45  ;;  %v1345_v22 = vadd.f32 1.0, %v1344_v12  ;;  %v3014_v1 = vmul.f32 0.6931472, %v1934_v26 }
 0x178   : > { %1945 = vlog2.f32 %v1350_v40  ;;  %v1354_v39 = vadd.f32 1.0, %v1353_v34  ;;  %v1359_v53 = vadd.f32 1.0, %v2622_v23  ;;  %vm3021_vm3 = vcmp.lt.f32.partialorder %v1329_v4, 0.0004427343  ;;  %v3540_v40 = vld [vmem:[#allocation36_spill] sm:$0xff] }
 0x179   : > { %3502 = vst [vmem:[#allocation52_spill] sm:$0xff] %v3014_v1  ;;  %v3026_v6 = vmul.f32 %v2609_v63, %v1336_v42  ;;  %v1347_v9 = vand.u32 2147483647, %v2602_v46  ;;  %v1362_v45 = vmul.f32 -0.5, %v2622_v23  ;;  %v3034_v12 = vmul.f32 0.6931472, %v1936_v31 }
 0x17a   : > { %vm3036_vm5 = vcmp.lt.f32.partialorder %v1338_v14, 0.0004427343  ;;  %v1356_v4 = vand.u32 2147483647, %v2630_v17  ;;  %1947 = vlog2.f32 %v1359_v53  ;;  %v3042_v63 = vmul.f32 %v2602_v46, %v1345_v22  ;;  %v1938_v52 = vpop.eup %1937  ;;  %v3571_v22 = vld [vmem:[#allocation42_spill] sm:$0xff] }
 0x17b   : > { %v1363_v42 = vadd.f32 1.0, %v1362_v45  ;;  %v1368_v34 = vadd.f32 1.0, %v2690_v5  ;;  %v1371_v26 = vmul.f32 -0.5, %v2690_v5  ;;  %v3051_v14 = vmul.f32 %v2630_v17, %v1354_v39 }
 0x17c   : > { %v1377_v50 = vadd.f32 1.0, %v2664_v51  ;;  %v1380_v53 = vmul.f32 -0.5, %v2664_v51  ;;  %v3055_v46 = vmul.f32 0.6931472, %v1938_v52  ;;  %vm3057_vm2 = vcmp.lt.f32.partialorder %v1347_v9, 0.0004427343 }
 0x17d   : > { %v1365_v45 = vand.u32 2147483647, %v2622_v23  ;;  %1949 = vlog2.f32 %v1368_v34  ;;  %v1372_v27 = vadd.f32 1.0, %v1371_v26  ;;  %v1313_v17 = vsel %vm2990_vm10, %v2985_v60, %v3034_v12  ;;  %v3511_v60 = vld [vmem:[#allocation19_spill] sm:$0xff] }
 0x17e   : > { %v1374_v39 = vand.u32 2147483647, %v2690_v5  ;;  %1951 = vlog2.f32 %v1377_v50  ;;  %v1381_v31 = vadd.f32 1.0, %v1380_v53  ;;  %v1940_v1 = vpop.eup %1939  ;;  %v1322_v52 = vsel %vm2997_vm4, %v3009_v55, %v3055_v46 }
 0x17f   : > { %vm3071_vm6 = vcmp.lt.f32.partialorder %v1356_v4, 0.0004427343  ;;  %v3076_v34 = vmul.f32 %v2622_v23, %v1363_v42  ;;  %v1383_v21 = vand.u32 2147483647, %v2664_v51  ;;  %v3512_v50 = vsel %vm2647_vm11, %v2639_v43, %v3511_v60  ;;  %v3513_v23 = vld [vmem:[#allocation23_spill] sm:$0xff] }
 0x180   : > { %v1425_v12 = vrot.slane %v3512_v50, %v2355_v57  ;;  %v1942_v26 = vpop.eup %1941  ;;  %v1325_v53 = vmul.f32 0.6931472, %v1940_v1  ;;  %v3086_v38 = vmul.f32 %v2690_v5, %v1372_v27  ;;  %v3514_v55 = vsel %vm2659_vm12, %v2642_v44, %v3513_v23  ;;  %v3520_v44 = vld [vmem:[#allocation18_spill] sm:$0xff] }
 0x181   : > { %v1430_v4 = vrot.slane %v3514_v55, %v2359_v58  ;;  %v3516_v42 = vsel %vm2669_vm13, %v2667_v7, %v3515_v10  ;;  %v1334_v46 = vmul.f32 0.6931472, %v1942_v26  ;;  %vm3100_vm4 = vcmp.lt.f32.partialorder %v1365_v45, 0.0004427343  ;;  %v3521_v27 = vld [vmem:[#allocation26_spill] sm:$0xff]  ;;  %v3523_v7 = vld [vmem:[#allocation21_spill] sm:$0xff] }
 0x182   : > { %v1434_v43 = vrot.slane %v3516_v42, %v2355_v57  ;;  %v3105_v5 = vmul.f32 %v2664_v51, %v1381_v31  ;;  %v3522_v60 = vsel %vm2682_vm14, %v3520_v44, %v3521_v27  ;;  %v3525_v26 = vsel %vm2696_vm15, %v3523_v7, %v3524_v16  ;;  %v1944_v23 = vpop.eup %1943  ;;  %v3527_v55 = vld [vmem:[#allocation22_spill] sm:$0xff]  ;;  %v3528_v10 = vld [vmem:[#allocation29_spill] sm:$0xff] }
 0x183   : > { %v1439_v50 = vrot.slane %v3522_v60, %v2359_v58  ;;  %v1443_v45 = vrot.slane %v3525_v26, %v2355_v57  ;;  %v1331_v51 = vsel %vm3021_vm3, %v3012_v54, %v1325_v53  ;;  %vm3526_vm11 = vcmask 130112   ;;  %v3545_v60 = vld [vmem:[#allocation37_spill] sm:$0xff] }
 0x184   : > { %v1426_v31 = vsel %vm3526_vm11, %v1425_v12, %v2967_v41  ;;  %v3529_v42 = vsel %vm2710_vm0, %v3527_v55, %v3528_v10  ;;  %v1452_v44 = vrot.slane %v3530_v49, %v2355_v57  ;;  %v1340_v47 = vsel %vm3036_vm5, %v3026_v6, %v1334_v46  ;;  %vm3531_vm3 = vmmov %vm3526_vm11  ;;  %v3533_v12 = vld [vmem:[#allocation35_spill] sm:$0xff]  ;;  %v3539_v6 = vld [vmem:[#allocation28_spill] sm:$0xff] }
 0x185   : > { %v1448_v61 = vrot.slane %v3529_v42, %v2359_v58  ;;  %v1343_v54 = vmul.f32 0.6931472, %v1944_v23  ;;  %v1435_v41 = vsel %vm3531_vm3, %v1434_v43, %v1430_v4  ;;  %v3534_v53 = vsel %vm2752_vm8, %v3532_v62, %v3533_v12  ;;  %vm3537_vm9 = vmmov %vm3531_vm3  ;;  %v3542_v43 = vld [vmem:[#allocation32_spill] sm:$0xff]  ;;  %v3549_v26 = vld [vmem:[#allocation33_spill] sm:$0xff]  ;;  %v1946_v55 = vpop.eup %1945 }
 0x186   : > { %v1457_v27 = vrot.slane %v3534_v53, %v2359_v58  ;;  %vm3146_vm12 = vcmp.lt.f32.partialorder %v1374_v39, 0.0004427343  ;;  %v1444_v28 = vsel %vm3537_vm9, %v1443_v45, %v1439_v50  ;;  %v3541_v46 = vsel %vm2764_vm7, %v3539_v6, %v3540_v40  ;;  %v3547_v39 = vld [vmem:[#allocation34_spill] sm:$0xff]  ;;  %v3550_v23 = vld [vmem:[#allocation39_spill] sm:$0xff]  ;;  %vm3554_vm7 = vmmov %vm3531_vm3 }
 0x187   : > { %v1461_v4 = vrot.slane %v3541_v46, %v2355_v57  ;;  %vm3543_vm5 = vnez %v3542_v43  ;;  %vm3548_vm8 = vnez %v3547_v39  ;;  %vm3169_vm13 = vcmp.lt.f32.partialorder %v1383_v21, 0.0004427343  ;;  %v3555_v49 = vld [vmem:[#allocation38_spill] sm:$0xff]  ;;  %v3561_v21 = vld [vmem:[#allocation43_spill] sm:$0xff]  ;;  %vm3563_vm10 = vmmov %vm3531_vm3  ;;  %v1948_v43 = vpop.eup %1947 }
 0x188   : > { %v3546_v7 = vsel %vm3543_vm5, %v3544_v13, %v3545_v60  ;;  %v3551_v50 = vsel %vm3548_vm8, %v3549_v26, %v3550_v23  ;;  %v1453_v42 = vsel %vm3554_vm7, %v1452_v44, %v1448_v61  ;;  %vm3556_vm14 = vnez %v3555_v49  ;;  %v3566_v40 = vld [vmem:[#allocation40_spill] sm:$0xff]  ;;  %vm3569_vm9 = vmmov %vm3531_vm3  ;;  %v3577_v39 = vld [vmem:[#allocation47_spill] sm:$0xff] }
 0x189   : > { %v1466_v16 = vrot.slane %v3546_v7, %v2359_v58  ;;  %v1470_v45 = vrot.slane %v3551_v50, %v2355_v57  ;;  %v3557_v62 = vsel %vm3556_vm14, %v2799_v30, %v2846_v32  ;;  %vm3558_vm15 = vnez %v3466_v59  ;;  %v3564_v59 = vld [vmem:[#allocation41_spill] sm:$0xff]  ;;  %vm3585_vm14 = vmmov %vm3531_vm3  ;;  %v3588_v49 = vld [vmem:[#allocation51_spill] sm:$0xff] }
 0x18a   : > { %v1475_v12 = vrot.slane %v3557_v62, %v2359_v58  ;;  %v3559_v53 = vsel %vm3558_vm15, %v2815_v0, %v2873_v20  ;;  %vm3560_vm0 = vnez %v3469_v3  ;;  %v1349_v6 = vsel %vm3057_vm2, %v3042_v63, %v1343_v54  ;;  %v3567_v0 = vld [vmem:[#allocation45_spill] sm:$0xff]  ;;  %v3572_v63 = vld [vmem:[#allocation46_spill] sm:$0xff] }
 0x18b   : > { %v1479_v2 = vrot.slane %v3559_v53, %v2355_v57  ;;  %v3562_v61 = vsel %vm3560_vm0, %v2832_v29, %v3561_v21  ;;  %v1352_v32 = vmul.f32 0.6931472, %v1946_v55  ;;  %v1462_v30 = vsel %vm3563_vm10, %v1461_v4, %v1457_v27  ;;  %v3575_v27 = vld [vmem:[#allocation50_spill] sm:$0xff]  ;;  %v3580_v26 = vld [vmem:[#allocation49_spill] sm:$0xff] }
 0x18c   : > { %v1484_v44 = vrot.slane %v3562_v61, %v2359_v58  ;;  %vm3565_vm11 = vnez %v3564_v59  ;;  %v1471_v3 = vsel %vm3531_vm3, %v1470_v45, %v1466_v16  ;;  %vm3570_vm5 = vnez %v3475_v35  ;;  %v3579_v35 = vld [vmem:[#allocation44_spill] sm:$0xff]  ;;  %v3605_v10 = vld [vmem:[#allocation14_spill] sm:$0xff] }
 0x18d   : > { %v3568_v20 = vsel %vm3565_vm11, %v3566_v40, %v3567_v0  ;;  %v1480_v29 = vsel %vm3569_vm9, %v1479_v2, %v1475_v12  ;;  %v3573_v54 = vsel %vm3570_vm5, %v3571_v22, %v3572_v63  ;;  %vm3574_vm2 = vnez %v3484_v15  ;;  %v3582_v45 = vld [vmem:[#allocation48_spill] sm:$0xff]  ;;  %v1950_v2 = vpop.eup %1949 }
 0x18e   : > { %v1488_v46 = vrot.slane %v3568_v20, %v2355_v57  ;;  %v1493_v13 = vrot.slane %v3573_v54, %v2359_v58  ;;  %v3576_v4 = vsel %vm3574_vm2, %v2907_v8, %v3575_v27  ;;  %v1358_v7 = vsel %vm3071_vm6, %v3051_v14, %v1352_v32 }
 0x18f   : > { %v1502_v60 = vrot.slane %v3576_v4, %v2359_v58  ;;  %v1361_v16 = vmul.f32 0.6931472, %v1948_v43  ;;  %vm3578_vm8 = vnez %v3577_v39  ;;  %vm3583_vm7 = vnez %v3582_v45  ;;  %v3614_v4 = vld [vmem:[#allocation16_spill] sm:$0xff] }
 0x190   : > { %v3581_v23 = vsel %vm3578_vm8, %v3579_v35, %v3580_v26  ;;  %v3584_v15 = vsel %vm3583_vm7, %v2910_v11, %v2969_v33  ;;  %v1489_v55 = vsel %vm3585_vm14, %v1488_v46, %v1484_v44  ;;  %v3586_v14 = vsel %vm2944_vm1, %v2929_v18, %v2988_v56  ;;  %v3591_v11 = vld [vmem:[#allocation52_spill] sm:$0xff]  ;;  %vm3593_vm1 = vmmov %vm3531_vm3  ;;  %v1952_v56 = vpop.eup %1951 }
 0x191   : > { %v1497_v50 = vrot.slane %v3581_v23, %v2355_v57  ;;  %v1506_v8 = vrot.slane %v3584_v15, %v2355_v57  ;;  %v1511_v9 = vrot.slane %v3586_v14, %v2359_v58  ;;  %vm3587_vm6 = vnez %v3493_v24  ;;  %vm3594_vm0 = vmmov %vm3593_vm1  ;;  %v3619_v23 = vld [vmem:[#allocation15_spill] sm:$0xff] }
 0x192   : > { %v3589_v62 = vsel %vm3587_vm6, %v2940_v37, %v3588_v49  ;;  %vm3590_vm15 = vnez %v3496_v19  ;;  %v1367_v18 = vsel %vm3100_vm4, %v3076_v34, %v1361_v16  ;;  %v1524_v24 = vrot.slane %v1313_v17, %v2355_v57  ;;  %vm3595_vm10 = vmmov %vm3594_vm0  ;;  %v3617_v16 = vld [vmem:[#allocation17_spill] sm:$0xff] }
 0x193   : > { %v1515_v12 = vrot.slane %v3589_v62, %v2355_v57  ;;  %v3592_v33 = vsel %vm3590_vm15, %v2955_v36, %v3591_v11  ;;  %v1498_v25 = vsel %vm3593_vm1, %v1497_v50, %v1493_v13  ;;  %v1529_v37 = vrot.slane %v1322_v52, %v2359_v58  ;;  %vm3596_vm11 = vmmov %vm3594_vm0 }
 0x194   : > { %v1520_v53 = vrot.slane %v3592_v33, %v2359_v58  ;;  %v1370_v21 = vmul.f32 0.6931472, %v1950_v2  ;;  %v1507_v19 = vsel %vm3594_vm0, %v1506_v8, %v1502_v60  ;;  %v1533_v61 = vrot.slane %v1331_v51, %v2355_v57  ;;  %vm3598_vm3 = vmmov %vm3594_vm0 }
 0x195   : > { %v1538_v36 = vrot.slane %v1340_v47, %v2359_v58  ;;  %v1379_v44 = vmul.f32 0.6931472, %v1952_v56  ;;  %v1516_v32 = vsel %vm3595_vm10, %v1515_v12, %v1511_v9  ;;  %v1542_v1 = vrot.slane %v1349_v6, %v2355_v57  ;;  %vm3600_vm5 = vmmov %vm3594_vm0 }
 0x196   : > { %v1525_v34 = vsel %vm3596_vm11, %v1524_v24, %v1520_v53  ;;  %v1376_v17 = vsel %vm3146_vm12, %v3086_v38, %v1370_v21  ;;  %v1547_v52 = vrot.slane %v1358_v7, %v2359_v58  ;;  %v1551_v59 = vrot.slane %v1367_v18, %v2355_v57  ;;  %vm3609_vm15 = vmmov %vm3594_vm0 }
 0x197   : > { %vm3597_vm4 = vcmask 1041409   ;;  %v1385_v51 = vsel %vm3169_vm13, %v3105_v5, %v1379_v44  ;;  %v1534_v47 = vsel %vm3598_vm3, %v1533_v61, %v1529_v37  ;;  %v1556_v0 = vrot.slane %v1376_v17, %v2359_v58  ;;  %vm3606_vm13 = vmmov %vm3594_vm0 }
 0x198   : > { %v1562_v40 = vsel %vm3597_vm4, %v1435_v41, %v1426_v31  ;;  %vm3599_vm9 = vcmask 1042434   ;;  %v1543_v48 = vsel %vm3600_vm5, %v1542_v1, %v1538_v36  ;;  %v1560_v38 = vrot.slane %v1385_v51, %v2355_v57  ;;  %vm3602_vm2 = vmmov %vm3597_vm4  ;;  %v1627_v1 = vld [vmem:[#allocation8] sm:$0x1] }
 0x199   : > { %v1563_v6 = vsel %vm3599_vm9, %v1444_v28, %v1562_v40  ;;  %vm3601_vm12 = vcmask 1043459   ;;  %v1569_v46 = vsel %vm3602_vm2, %v1507_v19, %v1498_v25  ;;  %vm3603_vm8 = vcmask 1044484   ;;  %vm3604_vm7 = vmmov %vm3599_vm9 }
 0x19a   : > { %v1564_v20 = vsel %vm3601_vm12, %v1453_v42, %v1563_v6  ;;  %v1570_v41 = vsel %vm3604_vm7, %v1516_v32, %v1569_v46  ;;  %v1583_v5 = vadd.s32 8, %v3605_v10  ;;  %v1584_v43 = vstv %s1747_s21  ;;  %vm3608_vm6 = vmmov %vm3601_vm12 }
 0x19b   : > { %v1565_v31 = vsel %vm3603_vm8, %v1462_v30, %v1564_v20  ;;  %v1552_v22 = vsel %vm3606_vm13, %v1551_v59, %v1547_v52  ;;  %vm3607_vm14 = vcmask 1045509   ;;  %v1571_v28 = vsel %vm3608_vm6, %v1525_v34, %v1570_v41  ;;  %vm3611_vm0 = vmmov %vm3603_vm8  ;;  %v1622_v34 = vld [vmem:[#allocation7] sm:$0x1] }
 0x19c   : > { %v1566_v58 = vsel %vm3607_vm14, %v1471_v3, %v1565_v31  ;;  %v1585_v63 = vadd.s32 %v1584_v43, %v3605_v10  ;;  %v1561_v57 = vsel %vm3609_vm15, %v1560_v38, %v1556_v0  ;;  %vm3610_vm1 = vcmask 1046534   ;;  %vm3613_vm11 = vmmov %vm3607_vm14 }
 0x19d   : > { %v1567_v42 = vsel %vm3610_vm1, %v1480_v29, %v1566_v58  ;;  %v1572_v54 = vsel %vm3611_vm0, %v1534_v47, %v1571_v28  ;;  %v1586_v30 = vadd.s32 %v1584_v43, %v1583_v5  ;;  %vm3612_vm10 = vcmask 1047559   ;;  %vm3616_vm3 = vmmov %vm3610_vm1 }
 0x19e   : > { %v1568_v13 = vsel %vm3612_vm10, %v1489_v55, %v1567_v42  ;;  %v1573_v27 = vsel %vm3613_vm11, %v1543_v48, %v1572_v54  ;;  %vm1587_vm4 = vcmp.lt.s32.totalorder %v1585_v63, 40  ;;  %v3615_v60 = vsub.f32 0.0, %v3614_v4  ;;  %vm3618_vm9 = vmmov %vm3612_vm10 }
 0x19f   : > { %v1574_v3 = vsel %vm3616_vm3, %v1552_v22, %v1573_v27  ;;  %v1578_v39 = vadd.f32 %v1568_v13, %v3617_v16  ;;  %vm1588_vm5 = vcmp.lt.s32.totalorder %v1586_v30, 40  ;;  %vm1593_vm12 = vcmask 130048  }
 0x1a0   : > { %v969_v7 = vmax.f32 %v3615_v60, 0.0  ;;  %v1575_v35 = vsel %vm3618_vm9, %v1561_v57, %v1574_v3  ;;  %vm3620_vm2 = vcmp.lt.s32.totalorder %v3619_v23, 6  ;;  %vm1625_vm14 = vcmask 0  }
 0x1a1   : > { %v1589_v29 = vsel %vm1587_vm4, %v1578_v39, 0.0  ;;  %vm3621_vm8 = vmmov %vm3620_vm2 }
 0x1a2   : > { %v1579_v26 = vadd.f32 %v1575_v35, %v969_v7  ;;  %v1607_v50 = vsel %vm3620_vm2, 0.0, %v1589_v29  ;;  %v1591_v45 = vsel %vm3621_vm8, %v1589_v29, 0.0  ;;  %vm3622_vm7 = vmmov %vm3620_vm2 }
 0x1a3   : > { %vm3623_vm13 = vmmov %vm3620_vm2  ;;  %v1609_v14 = vsel %vm1593_vm12, %v1607_v50, 0.0  ;;  %v1594_v49 = vsel %vm1593_vm12, %v1591_v45, 0.0 }
 0x1a4   : > { %v1590_v15 = vsel %vm1588_vm5, %v1579_v26, 0.0 }
 0x1a5   : > { %v1608_v8 = vsel %vm3622_vm7, 0.0, %v1590_v15  ;;  %v1592_v55 = vsel %vm3623_vm13, %v1590_v15, 0.0 }
 0x1a6   : > { %v1610_v9 = vsel %vm1593_vm12, %v1608_v8, 0.0  ;;  %v1595_v62 = vsel %vm1593_vm12, %v1592_v55, 0.0 }
 0x1a7   : > { %v1611_v12 = vadd.f32 %v1610_v9, %v1609_v14  ;;  %v1596_v11 = vadd.f32 %v1595_v62, %v1594_v49 }
 0x1a9   : > { %1612 = vadd.xlane.f32.xlu1 %v1611_v12  ;;  %1597 = vadd.xlane.f32.xlu0 %v1596_v11 }
 0x232   : > { %v1613_v33 = vpop.xlane.xlu1 %1612  ;;  %v1598_v53 = vpop.xlane.xlu0 %1597 }
 0x233   : > { %v1614_v2 = vrot.slane %v1613_v33, 4  ;;  %v1599_v18 = vrot.slane %v1598_v53, 4 }
 0x235   : > { %v1615_v25 = vadd.f32 %v1614_v2, %v1613_v33  ;;  %v1600_v24 = vadd.f32 %v1599_v18, %v1598_v53 }
 0x237   : > { %v1616_v37 = vrot.slane %v1615_v25, 2  ;;  %v1601_v56 = vrot.slane %v1600_v24, 2 }
 0x239   : > { %v1617_v21 = vadd.f32 %v1616_v37, %v1615_v25  ;;  %v1602_v19 = vadd.f32 %v1601_v56, %v1600_v24 }
 0x23b   : > { %v1603_v61 = vrot.slane %v1602_v19, 1  ;;  %v1618_v36 = vrot.slane %v1617_v21, 1 }
 0x23d   : > { %v1604_v44 = vadd.f32 %v1603_v61, %v1602_v19  ;;  %v1619_v32 = vadd.f32 %v1618_v36, %v1617_v21 }
 0x23f   : > { %1757 = vpush %v1604_v44 }
 0x240   : > { %1759 = vpush %v1619_v32 }
 0x270   : > { %s1758_s23 = spop %1757 }
 0x271   : > { %s1606_s7 = smul.f32 0.025, %s1758_s23  ;;  %s1760_s9 = spop %1759 }
 0x272   : > { %s1621_s27 = smul.f32 0.025, %s1760_s9 }
 0x273   : > { %v1623_v17 = vstv %s1606_s7 }
 0x274   : > { %v1624_v52 = vadd.f32 %v1623_v17, %v1622_v34  ;;  %v1628_v59 = vstv %s1621_s27 }
 0x275   : > { %v1629_v40 = vadd.f32 %v1628_v59, %v1627_v1 }
 0x276   : > { %1626 = vst.msk [vmem:[#allocation7] sm:$0x1] %vm1625_vm14, %v1624_v52 }
 0x277   : > { %2022 = shalt.err (!%p2019_p9)
}
 0x278   : > { %1766 = dma.vmem_to_hbm [thread:$0]  (%p1781_p8), %s1639_s28, 16, %s3344_s2, [#allocation4]   ;;  %1630 = vst.msk [vmem:[#allocation8] sm:$0x1] %vm1625_vm14, %v1629_v40 }
 0x279   : > { %s2033_s19 = scalar_lea.vmem %s1650_s10, 16  ;;  %s2039_s25 = scalar_lea.vmem %s1650_s10, 32 }
 0x27a   : > { %p2034_p13 = scmp.ne.s32.totalorder %s1650_s10, %s2033_s19  ;;  %p2040_p5 = scmp.lt.s32.totalorder %s1650_s10, %s1650_s10 }
 0x27b   : > { %p2041_p11 = scmp.lt.s32.totalorder %s2039_s25, %s2033_s19 }
 0x27c   : > { %p2035_p2 = pnand %p2034_p13, %p1781_p8 }
 0x27d   : > { %p2042_p7 = por %p2041_p11, %p2040_p5 }
 0x27e   : > { %p2036_p3 = pneg %p2035_p2 }
 0x280   : > { %p2043_p1 = pnand %p2042_p7, %p2036_p3 }
 0x282   : > { %2046 = shalt.err (!%p2043_p1)
}
 0x283   : > { %1768 = dma.vmem_to_hbm [thread:$0]  (%p1781_p8), %s1650_s10, 16, %s3345_s3, [#allocation9]  }
 0x284   : > { %2082 = dma.done.wait (%p1781_p8), [#allocation4], 16  }
 0x285   : > { %2084 = vsyncadd (%p1781_p8), [#allocation4], 4294967280 }
 0x286   : > { %2086 = dma.done.wait (%p1781_p8), [#allocation9], 16  }
 0x287   : > { %2088 = vsyncadd (%p1781_p8), [#allocation9], 4294967280 }
 0x288 PF: > { %p19_p4 = scmp.ge.s32.totalorder %s2155_s17, 5   ;;  %s3624_s12 = smov %s2095_s13 }
 0x289   : > { %s3625_s13 = smov %s2099_s14  ;;  %s3626_s14 = smov %s2165_s20 }
 0x28a   : > { %s3627_s15 = smov %s2155_s17  ;;  %21 = sbr.rel (!%p19_p4) target bundleno = 7 (0x7), region = 90 }
 0x28f   :  { %1666 = vsyncpa [#allocation3], 1 }
 0x290   :  { %1668 = vsyncpa [#allocation3 + $0x1], 1 }
 0x291   :  { %1669 = vsyncpa [#allocation6], 1 }
 0x292   :  { %1671 = vsyncpa [#allocation6 + $0x1], 1 }
 0x293   :  { %1672 = vsyncpa [#allocation4], 1 }
 0x294   :  { %1674 = vsyncpa [#allocation4 + $0x1], 1 }
 0x295   :  { %1675 = vsyncpa [#allocation9], 1 }

</bundles_post_ra>
